<compile_context>
chip_gen: v5e
topology: v5e:2x2
jax: 0.10.0
libtpu: 0.0.40
codegen_flags: <defaults>
</compile_context>

<pallas_src>
import functools

import jax
import jax.numpy as jnp
from jax import lax
from jax.experimental import pallas as pl
from jax.experimental.pallas import tpu as pltpu

OUT_LANES = 128  # lane-dense output slab width


# ----------------------------- Pallas kernel ------------------------------ #

def _cell_from_gates(gates, c, H):
    """LSTM elementwise update from pre-activations (PyTorch gate order i,f,g,o).

    sigmoid is applied to the full (B, 4H) block (one full-vreg EUP pass);
    tanh only on the g slice. c and gates stay f32.
    """
    s = jax.nn.sigmoid(gates)                       # (B, 4H)
    g = jnp.tanh(gates[:, 2 * H:3 * H])             # (B, H)
    c_new = s[:, H:2 * H] * c + s[:, :H] * g        # f*c + i*g
    h_new = s[:, 3 * H:] * jnp.tanh(c_new)          # o * tanh(c)
    return h_new, c_new


def lstm_kernel(x_ref,     # (T, Bb, Ip)  time-major, batch/input padded, f32
                wih1_ref,  # (Ip, 4H)     W_ih1^T (zero-padded rows), mxu dtype
                w1f_ref,   # (H, 8H)      [W_hh1^T | W_ih2^T],        mxu dtype
                whh2_ref,  # (H, 4H)      W_hh2^T,                    mxu dtype
                b1_ref,    # (1, 4H)      b_ih1 + b_hh1, f32
                b2_ref,    # (1, 4H)      b_ih2 + b_hh2, f32
                wfc_ref,   # (1, H)       fc weight row, f32
                bfc_ref,   # (1, 1)       fc bias, f32
                out_ref,   # (Bb, OUT_LANES)
                *, hidden_size):
    T, Bb, Ip = x_ref.shape
    H = hidden_size

    # Resident weights, loaded once.
    wih1 = wih1_ref[...]
    w1f = w1f_ref[...]
    whh2 = whh2_ref[...]
    mxu_dtype = w1f.dtype
    wih2 = w1f[:, 4 * H:]          # W_ih2^T half; lane offset 256 is vreg-aligned

    # Loop-invariant layer-2 bias broadcast, hoisted out of the unrolled loop.
    b2f = jnp.broadcast_to(b2_ref[...], (Bb, 4 * H))

    # Fused layer-1 input projection (off the recurrence critical path):
    # one (T*Bb, Ip) @ (Ip, 4H) MXU pass, bias folded in once.
    x_flat = x_ref[...].reshape(T * Bb, Ip).astype(mxu_dtype)
    xp1 = jnp.dot(x_flat, wih1,
                  preferred_element_type=jnp.float32) + b1_ref[...]   # (T*Bb, 4H)

    c1 = jnp.zeros((Bb, H), jnp.float32)
    c2 = jnp.zeros((Bb, H), jnp.float32)
    rec1 = jnp.zeros((Bb, 4 * H), jnp.float32)   # h1(t-1) @ W_hh1^T
    rec2 = jnp.zeros((Bb, 4 * H), jnp.float32)   # h2(t-1) @ W_hh2^T
    h2 = jnp.zeros((Bb, H), jnp.float32)

    # Fully unrolled time loop (T is static) -> scheduler sees the whole chain.
    for t in range(T):
        # ---- layer 1: input projection already done; only recurrence left.
        gates1 = xp1[t * Bb:(t + 1) * Bb, :] + rec1                  # (Bb, 4H)
        h1, c1 = _cell_from_gates(gates1, c1, H)
        h1m = h1.astype(mxu_dtype)

        if t < T - 1:
            # Shared-LHS fused matmul: [h1@W_hh1 | h1@W_ih2] in one MXU pass.
            fused = jnp.dot(h1m, w1f,
                            preferred_element_type=jnp.float32)      # (Bb, 8H)
            rec1 = fused[:, :4 * H]                                  # for t+1
            g2in = fused[:, 4 * H:]
        else:
            # Last step: the W_hh1 half is dead work -> only the W_ih2 half.
            g2in = jnp.dot(h1m, wih2,
                           preferred_element_type=jnp.float32)       # (Bb, 4H)

        gates2 = g2in + rec2 + b2f                                   # (Bb, 4H)
        h2, c2 = _cell_from_gates(gates2, c2, H)

        if t < T - 1:
            # Last step's h2 @ W_hh2 is never consumed -> skip it.
            rec2 = jnp.dot(h2.astype(mxu_dtype), whh2,
                           preferred_element_type=jnp.float32)       # (Bb, 4H)

    # Final Linear(H, 1): elementwise multiply + lane reduction (no N=1 matmul),
    # stored lane-dense into a 128-wide slab (unmasked vst), sliced outside.
    y = jnp.sum(h2 * wfc_ref[...], axis=-1, keepdims=True) + bfc_ref[...]
    out_ref[...] = jnp.broadcast_to(y, (Bb, OUT_LANES)).astype(out_ref.dtype)


# -------------------- One-time parameter preparation ----------------------- #

def prepare_params(params, *, mxu_dtype=jnp.bfloat16):
    """Weight transposes / fusions / casts done once, outside the forward path.

    mxu_dtype controls the operand precision of the MXU matmuls (weights, h,
    and x). Cell state, gate pre-activations and accumulation are always f32.
    Use jnp.float32 for bit-faithful-to-reference numerics.
    """
    H = params["whh1"].shape[1]          # w_hh_l0 has shape (4H, H)
    I = params["wih1"].shape[1]
    I_pad = max(8, ((I + 7) // 8) * 8)   # pad contraction dim for clean tiling

    wih1_t = jnp.zeros((I_pad, 4 * H), jnp.float32)
    wih1_t = wih1_t.at[:I].set(params["wih1"].T.astype(jnp.float32))
    w1f = jnp.concatenate([params["whh1"].T, params["wih2"].T], axis=1)

    return dict(
        hidden_size=H,
        input_size=I,
        wih1=wih1_t.astype(mxu_dtype),                                # (Ip, 4H)
        w1f=w1f.astype(mxu_dtype),                                    # (H, 8H)
        whh2=params["whh2"].T.astype(mxu_dtype),                      # (H, 4H)
        b1=(params["bih1"] + params["bhh1"]).reshape(1, -1).astype(jnp.float32),
        b2=(params["bih2"] + params["bhh2"]).reshape(1, -1).astype(jnp.float32),
        wfc=params["wfc"].reshape(1, -1).astype(jnp.float32),         # (1, H)
        bfc=params["bfc"].reshape(1, 1).astype(jnp.float32),          # (1, 1)
    )


# ------------------------------- Wrapper ----------------------------------- #

def _pick_batch_tile(b_pad):
    """Batch tile: as large as practical (multiple of 8), capped at 256 rows.

    256 keeps the in-kernel activation buffer (T*bb*4H f32) comfortably inside
    v7x's 64 MiB VMEM while giving the 256x256 MXU decent row utilization; on
    v7x large batches then get nb >= 2 grid steps which shard across both
    TensorCores via the "parallel" batch axis.
    """
    if b_pad <= 256:
        return b_pad
    for bb in range(256, 7, -8):
        if b_pad % bb == 0:
            return bb
    return 8


def lstm_forward(x, prep):
    """x: (B, T, I) float32, batch-first (matches the PyTorch module)."""
    B, T, I = x.shape
    H = prep["hidden_size"]
    I_pad = prep["wih1"].shape[0]

    # Pad batch to a multiple of 8 (full sublane occupancy); padded rows are
    # computed independently and discarded.
    B_pad = ((B + 7) // 8) * 8
    bb = _pick_batch_tile(B_pad)
    nb = B_pad // bb

    # Tiny time-major relayout of the raw input (T*B*I elements only).
    x_tm = jnp.transpose(x.astype(jnp.float32), (1, 0, 2))            # (T, B, I)
    if B_pad != B or I_pad != I:
        x_tm = jnp.zeros((T, B_pad, I_pad), jnp.float32).at[:, :B, :I].set(x_tm)

    out = pl.pallas_call(
        functools.partial(lstm_kernel, hidden_size=H),
        out_shape=jax.ShapeDtypeStruct((B_pad, OUT_LANES), jnp.float32),
        grid_spec=pltpu.PrefetchScalarGridSpec(
            num_scalar_prefetch=0,
            grid=(nb,),
            in_specs=[
                pl.BlockSpec((T, bb, I_pad), lambda b: (0, b, 0)),    # x
                pl.BlockSpec((I_pad, 4 * H), lambda b: (0, 0)),       # wih1
                pl.BlockSpec((H, 8 * H), lambda b: (0, 0)),           # w1f
                pl.BlockSpec((H, 4 * H), lambda b: (0, 0)),           # whh2
                pl.BlockSpec((1, 4 * H), lambda b: (0, 0)),           # b1
                pl.BlockSpec((1, 4 * H), lambda b: (0, 0)),           # b2
                pl.BlockSpec((1, H), lambda b: (0, 0)),               # wfc
                pl.BlockSpec((1, 1), lambda b: (0, 0)),               # bfc
            ],
            out_specs=pl.BlockSpec((bb, OUT_LANES), lambda b: (b, 0)),
        ),
        compiler_params=pltpu.CompilerParams(
            dimension_semantics=("parallel",)),
    )(x_tm, prep["wih1"], prep["w1f"], prep["whh2"],
      prep["b1"], prep["b2"], prep["wfc"], prep["bfc"])

    # NOTE: torch's .squeeze() only collapses the batch dim when B == 1;
    # for B > 1 the result is (B, 1), which is what we return.
    return out[:B, :1]


# ------------------------ Deterministic parameter init --------------------- #

def init_params(key, input_size=6, hidden_size=64):
    H = hidden_size
    k = 1.0 / jnp.sqrt(jnp.float32(H))   # PyTorch default U(-1/sqrt(H), 1/sqrt(H))
    keys = jax.random.split(key, 10)
    u = lambda kk, shape: jax.random.uniform(kk, shape, jnp.float32, -k, k)
    return dict(
        wih1=u(keys[0], (4 * H, input_size)),
        whh1=u(keys[1], (4 * H, H)),
        bih1=u(keys[2], (4 * H,)),
        bhh1=u(keys[3], (4 * H,)),
        wih2=u(keys[4], (4 * H, H)),
        whh2=u(keys[5], (4 * H, H)),
        bih2=u(keys[6], (4 * H,)),
        bhh2=u(keys[7], (4 * H,)),
        wfc=u(keys[8], (1, H)),
        bfc=u(keys[9], (1,)),
    )


# ---------------------------- Pure-JAX reference --------------------------- #

def lstm_reference(x, params):
    B, T, I = x.shape
    H = params["whh1"].shape[1]

    def cell(x_t, h, c, w_ih, w_hh, b_ih, b_hh):
        gates = x_t @ w_ih.T + b_ih + h @ w_hh.T + b_hh
        i = jax.nn.sigmoid(gates[:, 0 * H:1 * H])
        f = jax.nn.sigmoid(gates[:, 1 * H:2 * H])
        g = jnp.tanh(gates[:, 2 * H:3 * H])
        o = jax.nn.sigmoid(gates[:, 3 * H:4 * H])
        c = f * c + i * g
        h = o * jnp.tanh(c)
        return h, c

    def scan_fn(carry, x_t):
        h1, c1, h2, c2 = carry
        h1, c1 = cell(x_t, h1, c1, params["wih1"], params["whh1"],
                      params["bih1"], params["bhh1"])
        h2, c2 = cell(h1, h2, c2, params["wih2"], params["whh2"],
                      params["bih2"], params["bhh2"])
        return (h1, c1, h2, c2), None

    z = jnp.zeros((B, H), jnp.float32)
    (h1, c1, h2, c2), _ = lax.scan(scan_fn, (z, z, z, z),
                                   jnp.transpose(x, (1, 0, 2)))
    return h2 @ params["wfc"].T + params["bfc"]


# ---------------------------------- Main ----------------------------------- #

if __name__ == "__main__":
    B, T, I, H = 4, 8, 6, 64
    key = jax.random.PRNGKey(0)
    kx, kp = jax.random.split(key)

    x = jax.random.normal(kx, (B, T, I), jnp.float32)
    params = init_params(kp, input_size=I, hidden_size=H)

    ref = lstm_reference(x, params)

    # Exact-precision path (f32 MXU operands): must match the f32 reference.
    prep_f32 = prepare_params(params, mxu_dtype=jnp.float32)
    out_f32 = jax.block_until_ready(lstm_forward(x, prep_f32))
    assert out_f32.shape == (B, 1), out_f32.shape
    assert jnp.allclose(out_f32, ref, atol=1e-4, rtol=1e-4), (out_f32, ref)

    # Perf path: bf16 operands on the MXU matmuls (f32 state/accumulation).
    # Looser tolerance accounts only for bf16 operand rounding over 8 steps.
    prep_bf16 = prepare_params(params, mxu_dtype=jnp.bfloat16)
    out_bf16 = jax.block_until_ready(lstm_forward(x, prep_bf16))
    assert out_bf16.shape == (B, 1), out_bf16.shape
    assert jnp.allclose(out_bf16, ref, atol=3e-2, rtol=3e-2), (out_bf16, ref)

    print("KERNEL_OK")
</pallas_src>

<mosaic_0001>
module attributes {stable_mosaic.version = 11 : i64} {
  func.func @lstm_kernel(%arg0: i32, %arg1: memref<8x8x8xf32, #tpu.memory_space<vmem>>, %arg2: memref<8x256xf32, #tpu.memory_space<vmem>>, %arg3: memref<64x512xf32, #tpu.memory_space<vmem>>, %arg4: memref<64x256xf32, #tpu.memory_space<vmem>>, %arg5: memref<1x256xf32, #tpu.memory_space<vmem>>, %arg6: memref<1x256xf32, #tpu.memory_space<vmem>>, %arg7: memref<1x64xf32, #tpu.memory_space<vmem>>, %arg8: memref<1x1xf32, #tpu.memory_space<vmem>>, %arg9: memref<8x128xf32, #tpu.memory_space<vmem>>) attributes {dimension_semantics = [#tpu.dimension_semantics<parallel>], iteration_bounds = array<i64: 1>, scalar_prefetch = 0 : i64, scratch_operands = 0 : i64, tpu.core_type = #tpu.core_type<tc>, window_params = [{transform_indices = @transform_0, window_bounds = array<i64: 8, 8, 8>}, {pipeline_mode = #tpu.pipeline_mode<synchronous>, transform_indices = @transform_1, window_bounds = array<i64: 8, 256>}, {pipeline_mode = #tpu.pipeline_mode<synchronous>, transform_indices = @transform_2, window_bounds = array<i64: 64, 512>}, {pipeline_mode = #tpu.pipeline_mode<synchronous>, transform_indices = @transform_3, window_bounds = array<i64: 64, 256>}, {pipeline_mode = #tpu.pipeline_mode<synchronous>, transform_indices = @transform_4, window_bounds = array<i64: 1, 256>}, {pipeline_mode = #tpu.pipeline_mode<synchronous>, transform_indices = @transform_5, window_bounds = array<i64: 1, 256>}, {pipeline_mode = #tpu.pipeline_mode<synchronous>, transform_indices = @transform_6, window_bounds = array<i64: 1, 64>}, {pipeline_mode = #tpu.pipeline_mode<synchronous>, transform_indices = @transform_7, window_bounds = array<i64: 1, 1>}, {transform_indices = @transform_8, window_bounds = array<i64: 8, 128>}]} {
    %c0 = arith.constant 0 : index
    %c0_0 = arith.constant 0 : index
    %0 = vector.load %arg2[%c0, %c0_0] : memref<8x256xf32, #tpu.memory_space<vmem>>, vector<8x256xf32>
    %c0_1 = arith.constant 0 : index
    %c0_2 = arith.constant 0 : index
    %1 = vector.load %arg3[%c0_1, %c0_2] : memref<64x512xf32, #tpu.memory_space<vmem>>, vector<64x512xf32>
    %c0_3 = arith.constant 0 : index
    %c0_4 = arith.constant 0 : index
    %2 = vector.load %arg4[%c0_3, %c0_4] : memref<64x256xf32, #tpu.memory_space<vmem>>, vector<64x256xf32>
    %3 = vector.extract_strided_slice %1 {offsets = [0, 256], sizes = [64, 256], strides = [1, 1]} : vector<64x512xf32> to vector<64x256xf32>
    %c0_5 = arith.constant 0 : index
    %c0_6 = arith.constant 0 : index
    %4 = vector.load %arg6[%c0_5, %c0_6] : memref<1x256xf32, #tpu.memory_space<vmem>>, vector<1x256xf32>
    %5 = vector.shape_cast %4 : vector<1x256xf32> to vector<1x256xf32>
    %6 = vector.broadcast %5 : vector<1x256xf32> to vector<8x256xf32>
    %c0_7 = arith.constant 0 : index
    %c0_8 = arith.constant 0 : index
    %c0_9 = arith.constant 0 : index
    %7 = vector.load %arg1[%c0_7, %c0_8, %c0_9] : memref<8x8x8xf32, #tpu.memory_space<vmem>>, vector<8x8x8xf32>
    %8 = vector.shape_cast %7 : vector<8x8x8xf32> to vector<64x8xf32>
    %cst = arith.constant dense<0.000000e+00> : vector<64x256xf32>
    %9 = tpu.matmul %8, %0, %cst {dimension_numbers = #tpu.dot_dimension_numbers<[1], [0], [0], [1], [0, 0, 1, 1], [], []>} : vector<64x8xf32>, vector<8x256xf32>, vector<64x256xf32> -> vector<64x256xf32>
    %c0_10 = arith.constant 0 : index
    %c0_11 = arith.constant 0 : index
    %10 = vector.load %arg5[%c0_10, %c0_11] : memref<1x256xf32, #tpu.memory_space<vmem>>, vector<1x256xf32>
    %11 = vector.broadcast %10 : vector<1x256xf32> to vector<64x256xf32>
    %12 = arith.addf %9, %11 : vector<64x256xf32>
    %cst_12 = arith.constant 0.000000e+00 : f32
    %13 = vector.broadcast %cst_12 : f32 to vector<8x64xf32>
    %cst_13 = arith.constant 0.000000e+00 : f32
    %14 = vector.broadcast %cst_13 : f32 to vector<8x64xf32>
    %cst_14 = arith.constant 0.000000e+00 : f32
    %15 = vector.broadcast %cst_14 : f32 to vector<8x256xf32>
    %cst_15 = arith.constant 0.000000e+00 : f32
    %16 = vector.broadcast %cst_15 : f32 to vector<8x256xf32>
    %17 = vector.extract_strided_slice %12 {offsets = [0, 0], sizes = [8, 256], strides = [1, 1]} : vector<64x256xf32> to vector<8x256xf32>
    %18 = arith.addf %17, %15 : vector<8x256xf32>
    %19 = arith.negf %18 : vector<8x256xf32>
    %20 = math.exp %19 : vector<8x256xf32>
    %cst_16 = arith.constant 1.000000e+00 : f32
    %21 = vector.broadcast %cst_16 : f32 to vector<8x256xf32>
    %22 = arith.addf %21, %20 : vector<8x256xf32>
    %23 = arith.divf %21, %22 : vector<8x256xf32>
    %24 = vector.extract_strided_slice %18 {offsets = [0, 128], sizes = [8, 64], strides = [1, 1]} : vector<8x256xf32> to vector<8x64xf32>
    %25 = math.tanh %24 : vector<8x64xf32>
    %26 = vector.extract_strided_slice %23 {offsets = [0, 64], sizes = [8, 64], strides = [1, 1]} : vector<8x256xf32> to vector<8x64xf32>
    %27 = arith.mulf %26, %13 : vector<8x64xf32>
    %28 = vector.extract_strided_slice %23 {offsets = [0, 0], sizes = [8, 64], strides = [1, 1]} : vector<8x256xf32> to vector<8x64xf32>
    %29 = arith.mulf %28, %25 : vector<8x64xf32>
    %30 = arith.addf %27, %29 : vector<8x64xf32>
    %31 = vector.extract_strided_slice %23 {offsets = [0, 192], sizes = [8, 64], strides = [1, 1]} : vector<8x256xf32> to vector<8x64xf32>
    %32 = math.tanh %30 : vector<8x64xf32>
    %33 = arith.mulf %31, %32 : vector<8x64xf32>
    %cst_17 = arith.constant dense<0.000000e+00> : vector<8x512xf32>
    %34 = tpu.matmul %33, %1, %cst_17 {dimension_numbers = #tpu.dot_dimension_numbers<[1], [0], [0], [1], [0, 0, 1, 1], [], []>} : vector<8x64xf32>, vector<64x512xf32>, vector<8x512xf32> -> vector<8x512xf32>
    %35 = vector.extract_strided_slice %34 {offsets = [0, 0], sizes = [8, 256], strides = [1, 1]} : vector<8x512xf32> to vector<8x256xf32>
    %36 = vector.extract_strided_slice %34 {offsets = [0, 256], sizes = [8, 256], strides = [1, 1]} : vector<8x512xf32> to vector<8x256xf32>
    %37 = arith.addf %36, %16 : vector<8x256xf32>
    %38 = arith.addf %37, %6 : vector<8x256xf32>
    %39 = arith.negf %38 : vector<8x256xf32>
    %40 = math.exp %39 : vector<8x256xf32>
    %cst_18 = arith.constant 1.000000e+00 : f32
    %41 = vector.broadcast %cst_18 : f32 to vector<8x256xf32>
    %42 = arith.addf %41, %40 : vector<8x256xf32>
    %43 = arith.divf %41, %42 : vector<8x256xf32>
    %44 = vector.extract_strided_slice %38 {offsets = [0, 128], sizes = [8, 64], strides = [1, 1]} : vector<8x256xf32> to vector<8x64xf32>
    %45 = math.tanh %44 : vector<8x64xf32>
    %46 = vector.extract_strided_slice %43 {offsets = [0, 64], sizes = [8, 64], strides = [1, 1]} : vector<8x256xf32> to vector<8x64xf32>
    %47 = arith.mulf %46, %14 : vector<8x64xf32>
    %48 = vector.extract_strided_slice %43 {offsets = [0, 0], sizes = [8, 64], strides = [1, 1]} : vector<8x256xf32> to vector<8x64xf32>
    %49 = arith.mulf %48, %45 : vector<8x64xf32>
    %50 = arith.addf %47, %49 : vector<8x64xf32>
    %51 = vector.extract_strided_slice %43 {offsets = [0, 192], sizes = [8, 64], strides = [1, 1]} : vector<8x256xf32> to vector<8x64xf32>
    %52 = math.tanh %50 : vector<8x64xf32>
    %53 = arith.mulf %51, %52 : vector<8x64xf32>
    %cst_19 = arith.constant dense<0.000000e+00> : vector<8x256xf32>
    %54 = tpu.matmul %53, %2, %cst_19 {dimension_numbers = #tpu.dot_dimension_numbers<[1], [0], [0], [1], [0, 0, 1, 1], [], []>} : vector<8x64xf32>, vector<64x256xf32>, vector<8x256xf32> -> vector<8x256xf32>
    %55 = vector.extract_strided_slice %12 {offsets = [8, 0], sizes = [8, 256], strides = [1, 1]} : vector<64x256xf32> to vector<8x256xf32>
    %56 = arith.addf %55, %35 : vector<8x256xf32>
    %57 = arith.negf %56 : vector<8x256xf32>
    %58 = math.exp %57 : vector<8x256xf32>
    %cst_20 = arith.constant 1.000000e+00 : f32
    %59 = vector.broadcast %cst_20 : f32 to vector<8x256xf32>
    %60 = arith.addf %59, %58 : vector<8x256xf32>
    %61 = arith.divf %59, %60 : vector<8x256xf32>
    %62 = vector.extract_strided_slice %56 {offsets = [0, 128], sizes = [8, 64], strides = [1, 1]} : vector<8x256xf32> to vector<8x64xf32>
    %63 = math.tanh %62 : vector<8x64xf32>
    %64 = vector.extract_strided_slice %61 {offsets = [0, 64], sizes = [8, 64], strides = [1, 1]} : vector<8x256xf32> to vector<8x64xf32>
    %65 = arith.mulf %64, %30 : vector<8x64xf32>
    %66 = vector.extract_strided_slice %61 {offsets = [0, 0], sizes = [8, 64], strides = [1, 1]} : vector<8x256xf32> to vector<8x64xf32>
    %67 = arith.mulf %66, %63 : vector<8x64xf32>
    %68 = arith.addf %65, %67 : vector<8x64xf32>
    %69 = vector.extract_strided_slice %61 {offsets = [0, 192], sizes = [8, 64], strides = [1, 1]} : vector<8x256xf32> to vector<8x64xf32>
    %70 = math.tanh %68 : vector<8x64xf32>
    %71 = arith.mulf %69, %70 : vector<8x64xf32>
    %cst_21 = arith.constant dense<0.000000e+00> : vector<8x512xf32>
    %72 = tpu.matmul %71, %1, %cst_21 {dimension_numbers = #tpu.dot_dimension_numbers<[1], [0], [0], [1], [0, 0, 1, 1], [], []>} : vector<8x64xf32>, vector<64x512xf32>, vector<8x512xf32> -> vector<8x512xf32>
    %73 = vector.extract_strided_slice %72 {offsets = [0, 0], sizes = [8, 256], strides = [1, 1]} : vector<8x512xf32> to vector<8x256xf32>
    %74 = vector.extract_strided_slice %72 {offsets = [0, 256], sizes = [8, 256], strides = [1, 1]} : vector<8x512xf32> to vector<8x256xf32>
    %75 = arith.addf %74, %54 : vector<8x256xf32>
    %76 = arith.addf %75, %6 : vector<8x256xf32>
    %77 = arith.negf %76 : vector<8x256xf32>
    %78 = math.exp %77 : vector<8x256xf32>
    %cst_22 = arith.constant 1.000000e+00 : f32
    %79 = vector.broadcast %cst_22 : f32 to vector<8x256xf32>
    %80 = arith.addf %79, %78 : vector<8x256xf32>
    %81 = arith.divf %79, %80 : vector<8x256xf32>
    %82 = vector.extract_strided_slice %76 {offsets = [0, 128], sizes = [8, 64], strides = [1, 1]} : vector<8x256xf32> to vector<8x64xf32>
    %83 = math.tanh %82 : vector<8x64xf32>
    %84 = vector.extract_strided_slice %81 {offsets = [0, 64], sizes = [8, 64], strides = [1, 1]} : vector<8x256xf32> to vector<8x64xf32>
    %85 = arith.mulf %84, %50 : vector<8x64xf32>
    %86 = vector.extract_strided_slice %81 {offsets = [0, 0], sizes = [8, 64], strides = [1, 1]} : vector<8x256xf32> to vector<8x64xf32>
    %87 = arith.mulf %86, %83 : vector<8x64xf32>
    %88 = arith.addf %85, %87 : vector<8x64xf32>
    %89 = vector.extract_strided_slice %81 {offsets = [0, 192], sizes = [8, 64], strides = [1, 1]} : vector<8x256xf32> to vector<8x64xf32>
    %90 = math.tanh %88 : vector<8x64xf32>
    %91 = arith.mulf %89, %90 : vector<8x64xf32>
    %cst_23 = arith.constant dense<0.000000e+00> : vector<8x256xf32>
    %92 = tpu.matmul %91, %2, %cst_23 {dimension_numbers = #tpu.dot_dimension_numbers<[1], [0], [0], [1], [0, 0, 1, 1], [], []>} : vector<8x64xf32>, vector<64x256xf32>, vector<8x256xf32> -> vector<8x256xf32>
    %93 = vector.extract_strided_slice %12 {offsets = [16, 0], sizes = [8, 256], strides = [1, 1]} : vector<64x256xf32> to vector<8x256xf32>
    %94 = arith.addf %93, %73 : vector<8x256xf32>
    %95 = arith.negf %94 : vector<8x256xf32>
    %96 = math.exp %95 : vector<8x256xf32>
    %cst_24 = arith.constant 1.000000e+00 : f32
    %97 = vector.broadcast %cst_24 : f32 to vector<8x256xf32>
    %98 = arith.addf %97, %96 : vector<8x256xf32>
    %99 = arith.divf %97, %98 : vector<8x256xf32>
    %100 = vector.extract_strided_slice %94 {offsets = [0, 128], sizes = [8, 64], strides = [1, 1]} : vector<8x256xf32> to vector<8x64xf32>
    %101 = math.tanh %100 : vector<8x64xf32>
    %102 = vector.extract_strided_slice %99 {offsets = [0, 64], sizes = [8, 64], strides = [1, 1]} : vector<8x256xf32> to vector<8x64xf32>
    %103 = arith.mulf %102, %68 : vector<8x64xf32>
    %104 = vector.extract_strided_slice %99 {offsets = [0, 0], sizes = [8, 64], strides = [1, 1]} : vector<8x256xf32> to vector<8x64xf32>
    %105 = arith.mulf %104, %101 : vector<8x64xf32>
    %106 = arith.addf %103, %105 : vector<8x64xf32>
    %107 = vector.extract_strided_slice %99 {offsets = [0, 192], sizes = [8, 64], strides = [1, 1]} : vector<8x256xf32> to vector<8x64xf32>
    %108 = math.tanh %106 : vector<8x64xf32>
    %109 = arith.mulf %107, %108 : vector<8x64xf32>
    %cst_25 = arith.constant dense<0.000000e+00> : vector<8x512xf32>
    %110 = tpu.matmul %109, %1, %cst_25 {dimension_numbers = #tpu.dot_dimension_numbers<[1], [0], [0], [1], [0, 0, 1, 1], [], []>} : vector<8x64xf32>, vector<64x512xf32>, vector<8x512xf32> -> vector<8x512xf32>
    %111 = vector.extract_strided_slice %110 {offsets = [0, 0], sizes = [8, 256], strides = [1, 1]} : vector<8x512xf32> to vector<8x256xf32>
    %112 = vector.extract_strided_slice %110 {offsets = [0, 256], sizes = [8, 256], strides = [1, 1]} : vector<8x512xf32> to vector<8x256xf32>
    %113 = arith.addf %112, %92 : vector<8x256xf32>
    %114 = arith.addf %113, %6 : vector<8x256xf32>
    %115 = arith.negf %114 : vector<8x256xf32>
    %116 = math.exp %115 : vector<8x256xf32>
    %cst_26 = arith.constant 1.000000e+00 : f32
    %117 = vector.broadcast %cst_26 : f32 to vector<8x256xf32>
    %118 = arith.addf %117, %116 : vector<8x256xf32>
    %119 = arith.divf %117, %118 : vector<8x256xf32>
    %120 = vector.extract_strided_slice %114 {offsets = [0, 128], sizes = [8, 64], strides = [1, 1]} : vector<8x256xf32> to vector<8x64xf32>
    %121 = math.tanh %120 : vector<8x64xf32>
    %122 = vector.extract_strided_slice %119 {offsets = [0, 64], sizes = [8, 64], strides = [1, 1]} : vector<8x256xf32> to vector<8x64xf32>
    %123 = arith.mulf %122, %88 : vector<8x64xf32>
    %124 = vector.extract_strided_slice %119 {offsets = [0, 0], sizes = [8, 64], strides = [1, 1]} : vector<8x256xf32> to vector<8x64xf32>
    %125 = arith.mulf %124, %121 : vector<8x64xf32>
    %126 = arith.addf %123, %125 : vector<8x64xf32>
    %127 = vector.extract_strided_slice %119 {offsets = [0, 192], sizes = [8, 64], strides = [1, 1]} : vector<8x256xf32> to vector<8x64xf32>
    %128 = math.tanh %126 : vector<8x64xf32>
    %129 = arith.mulf %127, %128 : vector<8x64xf32>
    %cst_27 = arith.constant dense<0.000000e+00> : vector<8x256xf32>
    %130 = tpu.matmul %129, %2, %cst_27 {dimension_numbers = #tpu.dot_dimension_numbers<[1], [0], [0], [1], [0, 0, 1, 1], [], []>} : vector<8x64xf32>, vector<64x256xf32>, vector<8x256xf32> -> vector<8x256xf32>
    %131 = vector.extract_strided_slice %12 {offsets = [24, 0], sizes = [8, 256], strides = [1, 1]} : vector<64x256xf32> to vector<8x256xf32>
    %132 = arith.addf %131, %111 : vector<8x256xf32>
    %133 = arith.negf %132 : vector<8x256xf32>
    %134 = math.exp %133 : vector<8x256xf32>
    %cst_28 = arith.constant 1.000000e+00 : f32
    %135 = vector.broadcast %cst_28 : f32 to vector<8x256xf32>
    %136 = arith.addf %135, %134 : vector<8x256xf32>
    %137 = arith.divf %135, %136 : vector<8x256xf32>
    %138 = vector.extract_strided_slice %132 {offsets = [0, 128], sizes = [8, 64], strides = [1, 1]} : vector<8x256xf32> to vector<8x64xf32>
    %139 = math.tanh %138 : vector<8x64xf32>
    %140 = vector.extract_strided_slice %137 {offsets = [0, 64], sizes = [8, 64], strides = [1, 1]} : vector<8x256xf32> to vector<8x64xf32>
    %141 = arith.mulf %140, %106 : vector<8x64xf32>
    %142 = vector.extract_strided_slice %137 {offsets = [0, 0], sizes = [8, 64], strides = [1, 1]} : vector<8x256xf32> to vector<8x64xf32>
    %143 = arith.mulf %142, %139 : vector<8x64xf32>
    %144 = arith.addf %141, %143 : vector<8x64xf32>
    %145 = vector.extract_strided_slice %137 {offsets = [0, 192], sizes = [8, 64], strides = [1, 1]} : vector<8x256xf32> to vector<8x64xf32>
    %146 = math.tanh %144 : vector<8x64xf32>
    %147 = arith.mulf %145, %146 : vector<8x64xf32>
    %cst_29 = arith.constant dense<0.000000e+00> : vector<8x512xf32>
    %148 = tpu.matmul %147, %1, %cst_29 {dimension_numbers = #tpu.dot_dimension_numbers<[1], [0], [0], [1], [0, 0, 1, 1], [], []>} : vector<8x64xf32>, vector<64x512xf32>, vector<8x512xf32> -> vector<8x512xf32>
    %149 = vector.extract_strided_slice %148 {offsets = [0, 0], sizes = [8, 256], strides = [1, 1]} : vector<8x512xf32> to vector<8x256xf32>
    %150 = vector.extract_strided_slice %148 {offsets = [0, 256], sizes = [8, 256], strides = [1, 1]} : vector<8x512xf32> to vector<8x256xf32>
    %151 = arith.addf %150, %130 : vector<8x256xf32>
    %152 = arith.addf %151, %6 : vector<8x256xf32>
    %153 = arith.negf %152 : vector<8x256xf32>
    %154 = math.exp %153 : vector<8x256xf32>
    %cst_30 = arith.constant 1.000000e+00 : f32
    %155 = vector.broadcast %cst_30 : f32 to vector<8x256xf32>
    %156 = arith.addf %155, %154 : vector<8x256xf32>
    %157 = arith.divf %155, %156 : vector<8x256xf32>
    %158 = vector.extract_strided_slice %152 {offsets = [0, 128], sizes = [8, 64], strides = [1, 1]} : vector<8x256xf32> to vector<8x64xf32>
    %159 = math.tanh %158 : vector<8x64xf32>
    %160 = vector.extract_strided_slice %157 {offsets = [0, 64], sizes = [8, 64], strides = [1, 1]} : vector<8x256xf32> to vector<8x64xf32>
    %161 = arith.mulf %160, %126 : vector<8x64xf32>
    %162 = vector.extract_strided_slice %157 {offsets = [0, 0], sizes = [8, 64], strides = [1, 1]} : vector<8x256xf32> to vector<8x64xf32>
    %163 = arith.mulf %162, %159 : vector<8x64xf32>
    %164 = arith.addf %161, %163 : vector<8x64xf32>
    %165 = vector.extract_strided_slice %157 {offsets = [0, 192], sizes = [8, 64], strides = [1, 1]} : vector<8x256xf32> to vector<8x64xf32>
    %166 = math.tanh %164 : vector<8x64xf32>
    %167 = arith.mulf %165, %166 : vector<8x64xf32>
    %cst_31 = arith.constant dense<0.000000e+00> : vector<8x256xf32>
    %168 = tpu.matmul %167, %2, %cst_31 {dimension_numbers = #tpu.dot_dimension_numbers<[1], [0], [0], [1], [0, 0, 1, 1], [], []>} : vector<8x64xf32>, vector<64x256xf32>, vector<8x256xf32> -> vector<8x256xf32>
    %169 = vector.extract_strided_slice %12 {offsets = [32, 0], sizes = [8, 256], strides = [1, 1]} : vector<64x256xf32> to vector<8x256xf32>
    %170 = arith.addf %169, %149 : vector<8x256xf32>
    %171 = arith.negf %170 : vector<8x256xf32>
    %172 = math.exp %171 : vector<8x256xf32>
    %cst_32 = arith.constant 1.000000e+00 : f32
    %173 = vector.broadcast %cst_32 : f32 to vector<8x256xf32>
    %174 = arith.addf %173, %172 : vector<8x256xf32>
    %175 = arith.divf %173, %174 : vector<8x256xf32>
    %176 = vector.extract_strided_slice %170 {offsets = [0, 128], sizes = [8, 64], strides = [1, 1]} : vector<8x256xf32> to vector<8x64xf32>
    %177 = math.tanh %176 : vector<8x64xf32>
    %178 = vector.extract_strided_slice %175 {offsets = [0, 64], sizes = [8, 64], strides = [1, 1]} : vector<8x256xf32> to vector<8x64xf32>
    %179 = arith.mulf %178, %144 : vector<8x64xf32>
    %180 = vector.extract_strided_slice %175 {offsets = [0, 0], sizes = [8, 64], strides = [1, 1]} : vector<8x256xf32> to vector<8x64xf32>
    %181 = arith.mulf %180, %177 : vector<8x64xf32>
    %182 = arith.addf %179, %181 : vector<8x64xf32>
    %183 = vector.extract_strided_slice %175 {offsets = [0, 192], sizes = [8, 64], strides = [1, 1]} : vector<8x256xf32> to vector<8x64xf32>
    %184 = math.tanh %182 : vector<8x64xf32>
    %185 = arith.mulf %183, %184 : vector<8x64xf32>
    %cst_33 = arith.constant dense<0.000000e+00> : vector<8x512xf32>
    %186 = tpu.matmul %185, %1, %cst_33 {dimension_numbers = #tpu.dot_dimension_numbers<[1], [0], [0], [1], [0, 0, 1, 1], [], []>} : vector<8x64xf32>, vector<64x512xf32>, vector<8x512xf32> -> vector<8x512xf32>
    %187 = vector.extract_strided_slice %186 {offsets = [0, 0], sizes = [8, 256], strides = [1, 1]} : vector<8x512xf32> to vector<8x256xf32>
    %188 = vector.extract_strided_slice %186 {offsets = [0, 256], sizes = [8, 256], strides = [1, 1]} : vector<8x512xf32> to vector<8x256xf32>
    %189 = arith.addf %188, %168 : vector<8x256xf32>
    %190 = arith.addf %189, %6 : vector<8x256xf32>
    %191 = arith.negf %190 : vector<8x256xf32>
    %192 = math.exp %191 : vector<8x256xf32>
    %cst_34 = arith.constant 1.000000e+00 : f32
    %193 = vector.broadcast %cst_34 : f32 to vector<8x256xf32>
    %194 = arith.addf %193, %192 : vector<8x256xf32>
    %195 = arith.divf %193, %194 : vector<8x256xf32>
    %196 = vector.extract_strided_slice %190 {offsets = [0, 128], sizes = [8, 64], strides = [1, 1]} : vector<8x256xf32> to vector<8x64xf32>
    %197 = math.tanh %196 : vector<8x64xf32>
    %198 = vector.extract_strided_slice %195 {offsets = [0, 64], sizes = [8, 64], strides = [1, 1]} : vector<8x256xf32> to vector<8x64xf32>
    %199 = arith.mulf %198, %164 : vector<8x64xf32>
    %200 = vector.extract_strided_slice %195 {offsets = [0, 0], sizes = [8, 64], strides = [1, 1]} : vector<8x256xf32> to vector<8x64xf32>
    %201 = arith.mulf %200, %197 : vector<8x64xf32>
    %202 = arith.addf %199, %201 : vector<8x64xf32>
    %203 = vector.extract_strided_slice %195 {offsets = [0, 192], sizes = [8, 64], strides = [1, 1]} : vector<8x256xf32> to vector<8x64xf32>
    %204 = math.tanh %202 : vector<8x64xf32>
    %205 = arith.mulf %203, %204 : vector<8x64xf32>
    %cst_35 = arith.constant dense<0.000000e+00> : vector<8x256xf32>
    %206 = tpu.matmul %205, %2, %cst_35 {dimension_numbers = #tpu.dot_dimension_numbers<[1], [0], [0], [1], [0, 0, 1, 1], [], []>} : vector<8x64xf32>, vector<64x256xf32>, vector<8x256xf32> -> vector<8x256xf32>
    %207 = vector.extract_strided_slice %12 {offsets = [40, 0], sizes = [8, 256], strides = [1, 1]} : vector<64x256xf32> to vector<8x256xf32>
    %208 = arith.addf %207, %187 : vector<8x256xf32>
    %209 = arith.negf %208 : vector<8x256xf32>
    %210 = math.exp %209 : vector<8x256xf32>
    %cst_36 = arith.constant 1.000000e+00 : f32
    %211 = vector.broadcast %cst_36 : f32 to vector<8x256xf32>
    %212 = arith.addf %211, %210 : vector<8x256xf32>
    %213 = arith.divf %211, %212 : vector<8x256xf32>
    %214 = vector.extract_strided_slice %208 {offsets = [0, 128], sizes = [8, 64], strides = [1, 1]} : vector<8x256xf32> to vector<8x64xf32>
    %215 = math.tanh %214 : vector<8x64xf32>
    %216 = vector.extract_strided_slice %213 {offsets = [0, 64], sizes = [8, 64], strides = [1, 1]} : vector<8x256xf32> to vector<8x64xf32>
    %217 = arith.mulf %216, %182 : vector<8x64xf32>
    %218 = vector.extract_strided_slice %213 {offsets = [0, 0], sizes = [8, 64], strides = [1, 1]} : vector<8x256xf32> to vector<8x64xf32>
    %219 = arith.mulf %218, %215 : vector<8x64xf32>
    %220 = arith.addf %217, %219 : vector<8x64xf32>
    %221 = vector.extract_strided_slice %213 {offsets = [0, 192], sizes = [8, 64], strides = [1, 1]} : vector<8x256xf32> to vector<8x64xf32>
    %222 = math.tanh %220 : vector<8x64xf32>
    %223 = arith.mulf %221, %222 : vector<8x64xf32>
    %cst_37 = arith.constant dense<0.000000e+00> : vector<8x512xf32>
    %224 = tpu.matmul %223, %1, %cst_37 {dimension_numbers = #tpu.dot_dimension_numbers<[1], [0], [0], [1], [0, 0, 1, 1], [], []>} : vector<8x64xf32>, vector<64x512xf32>, vector<8x512xf32> -> vector<8x512xf32>
    %225 = vector.extract_strided_slice %224 {offsets = [0, 0], sizes = [8, 256], strides = [1, 1]} : vector<8x512xf32> to vector<8x256xf32>
    %226 = vector.extract_strided_slice %224 {offsets = [0, 256], sizes = [8, 256], strides = [1, 1]} : vector<8x512xf32> to vector<8x256xf32>
    %227 = arith.addf %226, %206 : vector<8x256xf32>
    %228 = arith.addf %227, %6 : vector<8x256xf32>
    %229 = arith.negf %228 : vector<8x256xf32>
    %230 = math.exp %229 : vector<8x256xf32>
    %cst_38 = arith.constant 1.000000e+00 : f32
    %231 = vector.broadcast %cst_38 : f32 to vector<8x256xf32>
    %232 = arith.addf %231, %230 : vector<8x256xf32>
    %233 = arith.divf %231, %232 : vector<8x256xf32>
    %234 = vector.extract_strided_slice %228 {offsets = [0, 128], sizes = [8, 64], strides = [1, 1]} : vector<8x256xf32> to vector<8x64xf32>
    %235 = math.tanh %234 : vector<8x64xf32>
    %236 = vector.extract_strided_slice %233 {offsets = [0, 64], sizes = [8, 64], strides = [1, 1]} : vector<8x256xf32> to vector<8x64xf32>
    %237 = arith.mulf %236, %202 : vector<8x64xf32>
    %238 = vector.extract_strided_slice %233 {offsets = [0, 0], sizes = [8, 64], strides = [1, 1]} : vector<8x256xf32> to vector<8x64xf32>
    %239 = arith.mulf %238, %235 : vector<8x64xf32>
    %240 = arith.addf %237, %239 : vector<8x64xf32>
    %241 = vector.extract_strided_slice %233 {offsets = [0, 192], sizes = [8, 64], strides = [1, 1]} : vector<8x256xf32> to vector<8x64xf32>
    %242 = math.tanh %240 : vector<8x64xf32>
    %243 = arith.mulf %241, %242 : vector<8x64xf32>
    %cst_39 = arith.constant dense<0.000000e+00> : vector<8x256xf32>
    %244 = tpu.matmul %243, %2, %cst_39 {dimension_numbers = #tpu.dot_dimension_numbers<[1], [0], [0], [1], [0, 0, 1, 1], [], []>} : vector<8x64xf32>, vector<64x256xf32>, vector<8x256xf32> -> vector<8x256xf32>
    %245 = vector.extract_strided_slice %12 {offsets = [48, 0], sizes = [8, 256], strides = [1, 1]} : vector<64x256xf32> to vector<8x256xf32>
    %246 = arith.addf %245, %225 : vector<8x256xf32>
    %247 = arith.negf %246 : vector<8x256xf32>
    %248 = math.exp %247 : vector<8x256xf32>
    %cst_40 = arith.constant 1.000000e+00 : f32
    %249 = vector.broadcast %cst_40 : f32 to vector<8x256xf32>
    %250 = arith.addf %249, %248 : vector<8x256xf32>
    %251 = arith.divf %249, %250 : vector<8x256xf32>
    %252 = vector.extract_strided_slice %246 {offsets = [0, 128], sizes = [8, 64], strides = [1, 1]} : vector<8x256xf32> to vector<8x64xf32>
    %253 = math.tanh %252 : vector<8x64xf32>
    %254 = vector.extract_strided_slice %251 {offsets = [0, 64], sizes = [8, 64], strides = [1, 1]} : vector<8x256xf32> to vector<8x64xf32>
    %255 = arith.mulf %254, %220 : vector<8x64xf32>
    %256 = vector.extract_strided_slice %251 {offsets = [0, 0], sizes = [8, 64], strides = [1, 1]} : vector<8x256xf32> to vector<8x64xf32>
    %257 = arith.mulf %256, %253 : vector<8x64xf32>
    %258 = arith.addf %255, %257 : vector<8x64xf32>
    %259 = vector.extract_strided_slice %251 {offsets = [0, 192], sizes = [8, 64], strides = [1, 1]} : vector<8x256xf32> to vector<8x64xf32>
    %260 = math.tanh %258 : vector<8x64xf32>
    %261 = arith.mulf %259, %260 : vector<8x64xf32>
    %cst_41 = arith.constant dense<0.000000e+00> : vector<8x512xf32>
    %262 = tpu.matmul %261, %1, %cst_41 {dimension_numbers = #tpu.dot_dimension_numbers<[1], [0], [0], [1], [0, 0, 1, 1], [], []>} : vector<8x64xf32>, vector<64x512xf32>, vector<8x512xf32> -> vector<8x512xf32>
    %263 = vector.extract_strided_slice %262 {offsets = [0, 0], sizes = [8, 256], strides = [1, 1]} : vector<8x512xf32> to vector<8x256xf32>
    %264 = vector.extract_strided_slice %262 {offsets = [0, 256], sizes = [8, 256], strides = [1, 1]} : vector<8x512xf32> to vector<8x256xf32>
    %265 = arith.addf %264, %244 : vector<8x256xf32>
    %266 = arith.addf %265, %6 : vector<8x256xf32>
    %267 = arith.negf %266 : vector<8x256xf32>
    %268 = math.exp %267 : vector<8x256xf32>
    %cst_42 = arith.constant 1.000000e+00 : f32
    %269 = vector.broadcast %cst_42 : f32 to vector<8x256xf32>
    %270 = arith.addf %269, %268 : vector<8x256xf32>
    %271 = arith.divf %269, %270 : vector<8x256xf32>
    %272 = vector.extract_strided_slice %266 {offsets = [0, 128], sizes = [8, 64], strides = [1, 1]} : vector<8x256xf32> to vector<8x64xf32>
    %273 = math.tanh %272 : vector<8x64xf32>
    %274 = vector.extract_strided_slice %271 {offsets = [0, 64], sizes = [8, 64], strides = [1, 1]} : vector<8x256xf32> to vector<8x64xf32>
    %275 = arith.mulf %274, %240 : vector<8x64xf32>
    %276 = vector.extract_strided_slice %271 {offsets = [0, 0], sizes = [8, 64], strides = [1, 1]} : vector<8x256xf32> to vector<8x64xf32>
    %277 = arith.mulf %276, %273 : vector<8x64xf32>
    %278 = arith.addf %275, %277 : vector<8x64xf32>
    %279 = vector.extract_strided_slice %271 {offsets = [0, 192], sizes = [8, 64], strides = [1, 1]} : vector<8x256xf32> to vector<8x64xf32>
    %280 = math.tanh %278 : vector<8x64xf32>
    %281 = arith.mulf %279, %280 : vector<8x64xf32>
    %cst_43 = arith.constant dense<0.000000e+00> : vector<8x256xf32>
    %282 = tpu.matmul %281, %2, %cst_43 {dimension_numbers = #tpu.dot_dimension_numbers<[1], [0], [0], [1], [0, 0, 1, 1], [], []>} : vector<8x64xf32>, vector<64x256xf32>, vector<8x256xf32> -> vector<8x256xf32>
    %283 = vector.extract_strided_slice %12 {offsets = [56, 0], sizes = [8, 256], strides = [1, 1]} : vector<64x256xf32> to vector<8x256xf32>
    %284 = arith.addf %283, %263 : vector<8x256xf32>
    %285 = arith.negf %284 : vector<8x256xf32>
    %286 = math.exp %285 : vector<8x256xf32>
    %cst_44 = arith.constant 1.000000e+00 : f32
    %287 = vector.broadcast %cst_44 : f32 to vector<8x256xf32>
    %288 = arith.addf %287, %286 : vector<8x256xf32>
    %289 = arith.divf %287, %288 : vector<8x256xf32>
    %290 = vector.extract_strided_slice %284 {offsets = [0, 128], sizes = [8, 64], strides = [1, 1]} : vector<8x256xf32> to vector<8x64xf32>
    %291 = math.tanh %290 : vector<8x64xf32>
    %292 = vector.extract_strided_slice %289 {offsets = [0, 64], sizes = [8, 64], strides = [1, 1]} : vector<8x256xf32> to vector<8x64xf32>
    %293 = arith.mulf %292, %258 : vector<8x64xf32>
    %294 = vector.extract_strided_slice %289 {offsets = [0, 0], sizes = [8, 64], strides = [1, 1]} : vector<8x256xf32> to vector<8x64xf32>
    %295 = arith.mulf %294, %291 : vector<8x64xf32>
    %296 = arith.addf %293, %295 : vector<8x64xf32>
    %297 = vector.extract_strided_slice %289 {offsets = [0, 192], sizes = [8, 64], strides = [1, 1]} : vector<8x256xf32> to vector<8x64xf32>
    %298 = math.tanh %296 : vector<8x64xf32>
    %299 = arith.mulf %297, %298 : vector<8x64xf32>
    %cst_45 = arith.constant dense<0.000000e+00> : vector<8x256xf32>
    %300 = tpu.matmul %299, %3, %cst_45 {dimension_numbers = #tpu.dot_dimension_numbers<[1], [0], [0], [1], [0, 0, 1, 1], [], []>} : vector<8x64xf32>, vector<64x256xf32>, vector<8x256xf32> -> vector<8x256xf32>
    %301 = arith.addf %300, %282 : vector<8x256xf32>
    %302 = arith.addf %301, %6 : vector<8x256xf32>
    %303 = arith.negf %302 : vector<8x256xf32>
    %304 = math.exp %303 : vector<8x256xf32>
    %cst_46 = arith.constant 1.000000e+00 : f32
    %305 = vector.broadcast %cst_46 : f32 to vector<8x256xf32>
    %306 = arith.addf %305, %304 : vector<8x256xf32>
    %307 = arith.divf %305, %306 : vector<8x256xf32>
    %308 = vector.extract_strided_slice %302 {offsets = [0, 128], sizes = [8, 64], strides = [1, 1]} : vector<8x256xf32> to vector<8x64xf32>
    %309 = math.tanh %308 : vector<8x64xf32>
    %310 = vector.extract_strided_slice %307 {offsets = [0, 64], sizes = [8, 64], strides = [1, 1]} : vector<8x256xf32> to vector<8x64xf32>
    %311 = arith.mulf %310, %278 : vector<8x64xf32>
    %312 = vector.extract_strided_slice %307 {offsets = [0, 0], sizes = [8, 64], strides = [1, 1]} : vector<8x256xf32> to vector<8x64xf32>
    %313 = arith.mulf %312, %309 : vector<8x64xf32>
    %314 = arith.addf %311, %313 : vector<8x64xf32>
    %315 = vector.extract_strided_slice %307 {offsets = [0, 192], sizes = [8, 64], strides = [1, 1]} : vector<8x256xf32> to vector<8x64xf32>
    %316 = math.tanh %314 : vector<8x64xf32>
    %317 = arith.mulf %315, %316 : vector<8x64xf32>
    %c0_47 = arith.constant 0 : index
    %c0_48 = arith.constant 0 : index
    %318 = vector.load %arg7[%c0_47, %c0_48] : memref<1x64xf32, #tpu.memory_space<vmem>>, vector<1x64xf32>
    %319 = vector.broadcast %318 : vector<1x64xf32> to vector<8x64xf32>
    %320 = arith.mulf %317, %319 : vector<8x64xf32>
    %cst_49 = arith.constant dense<0.000000e+00> : vector<8xf32>
    %321 = vector.multi_reduction <add>, %320, %cst_49 [1] : vector<8x64xf32> to vector<8xf32>
    %322 = vector.shape_cast %321 : vector<8xf32> to vector<8x1xf32>
    %c0_50 = arith.constant 0 : index
    %c0_51 = arith.constant 0 : index
    %323 = vector.load %arg8[%c0_50, %c0_51] : memref<1x1xf32, #tpu.memory_space<vmem>>, vector<1x1xf32>
    %324 = vector.broadcast %323 : vector<1x1xf32> to vector<8x1xf32>
    %325 = arith.addf %322, %324 : vector<8x1xf32>
    %326 = vector.shape_cast %325 : vector<8x1xf32> to vector<8x1xf32>
    %327 = vector.broadcast %326 : vector<8x1xf32> to vector<8x128xf32>
    %c0_52 = arith.constant 0 : index
    %c0_53 = arith.constant 0 : index
    %328 = vector.load %arg9[%c0_52, %c0_53] : memref<8x128xf32, #tpu.memory_space<vmem>>, vector<8x128xf32>
    tpu.vector_store %arg9[%c0_52, %c0_53], %327 {strides = array<i32>} : memref<8x128xf32, #tpu.memory_space<vmem>>, vector<8x128xf32>,
    return
  }
  func.func @transform_0(%arg0: i32) -> (i32, i32, i32) {
    %c0_i32 = arith.constant 0 : i32
    %c0_i32_0 = arith.constant 0 : i32
    %c0_i32_1 = arith.constant 0 : i32
    return %c0_i32, %arg0, %c0_i32_0 : i32, i32, i32
  }
  func.func @transform_1(%arg0: i32) -> (i32, i32) {
    %c0_i32 = arith.constant 0 : i32
    %c0_i32_0 = arith.constant 0 : i32
    %c0_i32_1 = arith.constant 0 : i32
    return %c0_i32, %c0_i32_0 : i32, i32
  }
  func.func @transform_2(%arg0: i32) -> (i32, i32) {
    %c0_i32 = arith.constant 0 : i32
    %c0_i32_0 = arith.constant 0 : i32
    %c0_i32_1 = arith.constant 0 : i32
    return %c0_i32, %c0_i32_0 : i32, i32
  }
  func.func @transform_3(%arg0: i32) -> (i32, i32) {
    %c0_i32 = arith.constant 0 : i32
    %c0_i32_0 = arith.constant 0 : i32
    %c0_i32_1 = arith.constant 0 : i32
    return %c0_i32, %c0_i32_0 : i32, i32
  }
  func.func @transform_4(%arg0: i32) -> (i32, i32) {
    %c0_i32 = arith.constant 0 : i32
    %c0_i32_0 = arith.constant 0 : i32
    %c0_i32_1 = arith.constant 0 : i32
    return %c0_i32, %c0_i32_0 : i32, i32
  }
  func.func @transform_5(%arg0: i32) -> (i32, i32) {
    %c0_i32 = arith.constant 0 : i32
    %c0_i32_0 = arith.constant 0 : i32
    %c0_i32_1 = arith.constant 0 : i32
    return %c0_i32, %c0_i32_0 : i32, i32
  }
  func.func @transform_6(%arg0: i32) -> (i32, i32) {
    %c0_i32 = arith.constant 0 : i32
    %c0_i32_0 = arith.constant 0 : i32
    %c0_i32_1 = arith.constant 0 : i32
    return %c0_i32, %c0_i32_0 : i32, i32
  }
  func.func @transform_7(%arg0: i32) -> (i32, i32) {
    %c0_i32 = arith.constant 0 : i32
    %c0_i32_0 = arith.constant 0 : i32
    %c0_i32_1 = arith.constant 0 : i32
    return %c0_i32, %c0_i32_0 : i32, i32
  }
  func.func @transform_8(%arg0: i32) -> (i32, i32) {
    %c0_i32 = arith.constant 0 : i32
    %c0_i32_0 = arith.constant 0 : i32
    return %arg0, %c0_i32 : i32, i32
  }
}

</mosaic_0001>

<bundles_post_ra>
// kernel: tpu_custom_call.1
= control target key start
LH: loop header
LB: loop body
LE: loop exit
PB: predicated region body
PF: predicated region fallthrough
CT: control target
= control target key end

     0   :  { %s3459_s0 = inlined_call_operand.hbm [shape: f32[8,8,8], index: 0, kind: input, shape index: {}]   ;;  %s3460_s1 = inlined_call_operand.hbm [shape: f32[8,256], index: 1, kind: input, shape index: {}]   ;;  %s3461_s2 = inlined_call_operand.hbm [shape: f32[64,512], index: 2, kind: input, shape index: {}]   ;;  %s3462_s3 = inlined_call_operand.hbm [shape: f32[64,256], index: 3, kind: input, shape index: {}]   ;;  %s3463_s4 = inlined_call_operand.vmem [shape: f32[1,256], index: 4, kind: input, shape index: {}]   ;;  %s3464_s5 = inlined_call_operand.vmem [shape: f32[1,256], index: 5, kind: input, shape index: {}]   ;;  %s3465_s6 = inlined_call_operand.vmem [shape: f32[1,64], index: 6, kind: input, shape index: {}]   ;;  %s3466_s7 = inlined_call_operand.<no memory space> [shape: f32[1,1], index: 7, kind: input, shape index: {}]   ;;  %s3467_s8 = inlined_call_operand.hbm [shape: f32[8,128], index: 8, kind: output, shape index: {}]  }
   0x1   :  { %v13_v0 = vstv %s3466_s7 }
   0x2   :  { %14 = vst [vmem:[#allocation2] sm:$0x1] %v13_v0 }
   0x3   :  { %15 = vsyncpa [#allocation4], 0 }
   0x4   :  { %16 = vsyncpa [#allocation7], 0 }
   0x5   :  { %17 = vsyncpa [#allocation10], 0  ;;  %s37_s9 = sshll.u32 %s3460_s1, 4  ;;  %s38_s9 = int_to_ptr.hbm [resolvable:$true] %s37_s9 }
   0x6   :  { %18 = vsyncpa [#allocation5], 0  ;;  %s2561_s10 = smov [#allocation6]   ;;  %s23_s14 = sshll.u32 %s3459_s0, 4  ;;  %s24_s14 = int_to_ptr.hbm [resolvable:$true] %s23_s14 }
   0x7   :  { %s39_s11 = sshll.u32 %s2561_s10, 4  ;;  %s2562_s7 = smov [#allocation3]   ;;  %s40_s11 = int_to_ptr.vmem [resolvable:$true] %s39_s11 }
   0x8   :  { %42 = dma.hbm_to_vmem [thread:$0]  %s38_s9, 256, %s40_s11, [#allocation7]  }
   0x9   :  { %s25_s15 = sshll.u32 %s2562_s7, 4  ;;  %s2563_s16 = smov 128   ;;  %s26_s15 = int_to_ptr.vmem [resolvable:$true] %s25_s15 }
   0xa   :  { %s2564_s17 = smov 8   ;;  %s47_s1 = sshll.u32 %s3461_s2, 4  ;;  %s48_s1 = int_to_ptr.hbm [resolvable:$true] %s47_s1 }
   0xb   :  { %31 = dma.hbm_to_vmem [thread:$0]  %s24_s14, 1024, %s26_s15, [#allocation4], %s2563_s16, %s2563_s16, %s2564_s17  }
   0xc   :  { %s2565_s20 = smov [#allocation8]   ;;  %s60_s0 = sshll.u32 %s3462_s3, 4  ;;  %s61_s0 = int_to_ptr.hbm [resolvable:$true] %s60_s0 }
   0xd   :  { %s49_s21 = sshll.u32 %s2565_s20, 4  ;;  %s2566_s24 = smov 512   ;;  %s50_s21 = int_to_ptr.vmem [resolvable:$true] %s49_s21 }
   0xe   :  { %s2567_s25 = smov 32   ;;  %s2568_s26 = smov [#allocation9]  }
   0xf   :  { %55 = dma.hbm_to_vmem [thread:$0]  %s48_s1, 4096, %s50_s21, [#allocation7], %s2566_s24, %s2566_s24, %s2567_s25  }
  0x10   :  { %s62_s27 = sshll.u32 %s2568_s26, 4  ;;  %s2569_s28 = smov 256   ;;  %s63_s27 = int_to_ptr.vmem [resolvable:$true] %s62_s27 }
  0x11   :  { %s2570_s29 = smov 16  }
  0x12   :  { %68 = dma.hbm_to_vmem [thread:$0]  %s61_s0, 2048, %s63_s27, [#allocation10], %s2569_s28, %s2569_s28, %s2570_s29  }
  0x13   :  { %2553 = dma.done.wait [#allocation4], 1024  }
  0x14   :  { %2554 = vsyncadd [#allocation4], 4294966272 }
  0x15   :  { %2555 = dma.done.wait [#allocation7], 4352  }
  0x16   :  { %2556 = vsyncadd [#allocation7], 4294962944 }
  0x17   :  { %2557 = dma.done.wait [#allocation10], 2048  }
  0x18   :  { %2558 = vsyncadd [#allocation10], 4294965248  ;;  %vm163_vm0 = vcmask 64512   ;;  %v93_v1 = vld [vmem:[#allocation6] sm:$0xff]  ;;  %v94_v3 = vld [vmem:[#allocation6 + $0x8] sm:$0xff]  ;;  %vm323_vm9 = vcmask 523264  }
  0x19   :  { %v149_v2 = vld [vmem:[#allocation3] sm:$0xff]  ;;  %203 = vmatpush.msra.mxu0 %v93_v1  ;;  %244 = vmatpush.msra.mxu1 %v94_v3  ;;  %v2651_v29 = vld [vmem:[#allocation8 + $0xe0] sm:$0xff]  ;;  %v2653_v30 = vld [vmem:[#allocation8 + $0xe8] sm:$0xff]  ;;  %s2072_s14 = sshll.u32 %s3467_s8, 4  ;;  %s2073_s14 = int_to_ptr.hbm [resolvable:$true] %s2072_s14 }
  0x1a   :  { %2084 = vmatmul.msk.f32.vlgmr.msra.gmra.mxu0 %vm163_vm0, %v149_v2  ;;  %2092 = vmatmul.msk.f32.vlgmr.msra.gmra.mxu1 %vm163_vm0, %v149_v2  ;;  %v157_v4 = vld [vmem:[%s3463_s4] sm:$0x3]  ;;  %s2571_s4 = smov 64   ;;  %v2655_v31 = vld [vmem:[#allocation8 + $0xc0] sm:$0xff]  ;;  %v2676_v38 = vld [vmem:[#allocation8 + $0xf8] sm:$0xff] }
  0x1b   :  { %v2639_v5 = vperm.slane %v157_v4, 0  ;;  %v2642_v11 = vperm.slane %v157_v4, 1  ;;  %334 = vmatpush.msra.mxu2 %v2651_v29  ;;  %354 = vmatpush.msra.mxu3 %v2653_v30  ;;  %v2660_v32 = vld [vmem:[#allocation8 + $0xc8] sm:$0xff]  ;;  %v2662_v33 = vld [vmem:[#allocation8 + $0xa0] sm:$0xff]  ;;  %v2674_v37 = vld [vmem:[#allocation8 + $0xf0] sm:$0xff] }
  0x1c   :  { %v2664_v34 = vld [vmem:[#allocation8 + $0xa8] sm:$0xff]  ;;  %v2668_v35 = vld [vmem:[#allocation8 + $0x80] sm:$0xff]  ;;  %606 = vmatpush.msrb.mxu0 %v2674_v37  ;;  %626 = vmatpush.msrb.mxu1 %v2676_v38  ;;  %v2686_v42 = vld [vmem:[#allocation8 + $0xd0] sm:$0xff] }
  0x1d   :  { %3501 = vst [vmem:[#allocation16_spill] sm:$0xff] %v2639_v5  ;;  %335 = vmatpush.msra.mxu2 %v2655_v31  ;;  %355 = vmatpush.msra.mxu3 %v2660_v32  ;;  %v2670_v36 = vld [vmem:[#allocation8 + $0x88] sm:$0xff]  ;;  %v2678_v39 = vld [vmem:[#allocation8 + $0x60] sm:$0xff]  ;;  %v2688_v43 = vld [vmem:[#allocation8 + $0xd8] sm:$0xff] }
  0x1e   :  { %3502 = vst [vmem:[#allocation17_spill] sm:$0xff] %v2642_v11  ;;  %v2680_v40 = vld [vmem:[#allocation8 + $0x68] sm:$0xff]  ;;  %v2690_v44 = vld [vmem:[#allocation8 + $0x40] sm:$0xff]  ;;  %607 = vmatpush.msrb.mxu0 %v2686_v42  ;;  %627 = vmatpush.msrb.mxu1 %v2688_v43  ;;  %v2698_v46 = vld [vmem:[#allocation8 + $0xb0] sm:$0xff] }
  0x1f   :  { %336 = vmatpush.msra.mxu2 %v2662_v33  ;;  %356 = vmatpush.msra.mxu3 %v2664_v34  ;;  %v2692_v45 = vld [vmem:[#allocation8 + $0x48] sm:$0xff]  ;;  %v2700_v47 = vld [vmem:[#allocation8 + $0xb8] sm:$0xff]  ;;  %v2703_v49 = vld [vmem:[#allocation8 + $0x20] sm:$0xff] }
  0x20   :  { %v2705_v50 = vld [vmem:[#allocation8 + $0x28] sm:$0xff]  ;;  %608 = vmatpush.msrb.mxu0 %v2698_v46  ;;  %628 = vmatpush.msrb.mxu1 %v2700_v47  ;;  %v2711_v51 = vld [vmem:[#allocation8 + $0x90] sm:$0xff]  ;;  %v2713_v52 = vld [vmem:[#allocation8 + $0x98] sm:$0xff] }
  0x21   :  { %337 = vmatpush.msra.mxu2 %v2668_v35  ;;  %357 = vmatpush.msra.mxu3 %v2670_v36  ;;  %v2715_v53 = vld [vmem:[#allocation8] sm:$0xff]  ;;  %v2717_v54 = vld [vmem:[#allocation8 + $0x8] sm:$0xff]  ;;  %v2741_v4 = vld [vmem:[#allocation8 + $0x70] sm:$0xff] }
  0x22   :  { %609 = vmatpush.msrb.mxu0 %v2711_v51  ;;  %629 = vmatpush.msrb.mxu1 %v2713_v52 }
  0x23   :  { %338 = vmatpush.msra.mxu2 %v2678_v39  ;;  %358 = vmatpush.msra.mxu3 %v2680_v40 }
  0x24   :  { %610 = vmatpush.msrb.mxu0 %v2741_v4 }
  0x25   :  { %339 = vmatpush.msra.mxu2 %v2690_v44  ;;  %359 = vmatpush.msra.mxu3 %v2692_v45 }
  0x27   :  { %340 = vmatpush.msra.mxu2 %v2703_v49  ;;  %360 = vmatpush.msra.mxu3 %v2705_v50 }
  0x29   :  { %341 = vmatpush.msra.mxu2 %v2715_v53  ;;  %361 = vmatpush.msra.mxu3 %v2717_v54 }
  0x2b   :  { %374 = vmatpush.msrb.mxu2 %v2674_v37  ;;  %394 = vmatpush.msrb.mxu3 %v2676_v38 }
  0x2d   :  { %375 = vmatpush.msrb.mxu2 %v2686_v42  ;;  %395 = vmatpush.msrb.mxu3 %v2688_v43 }
  0x2f   :  { %376 = vmatpush.msrb.mxu2 %v2698_v46  ;;  %396 = vmatpush.msrb.mxu3 %v2700_v47 }
  0x31   :  { %377 = vmatpush.msrb.mxu2 %v2711_v51  ;;  %397 = vmatpush.msrb.mxu3 %v2713_v52 }
  0x33   :  { %378 = vmatpush.msrb.mxu2 %v2741_v4 }
  0x97   :  { %v205_v6 = vpop.f32.mrf.mxu0  ;;  %v246_v12 = vpop.f32.mrf.mxu1 }
  0x98   :  { %v206_v7 = vadd.f32 %v205_v6, %v2639_v5  ;;  %v247_v14 = vadd.f32 %v246_v12, %v2642_v11  ;;  %v2743_v6 = vld [vmem:[#allocation8 + $0x78] sm:$0xff] }
  0x99   :  { %398 = vmatpush.msrb.mxu3 %v2743_v6  ;;  %v2755_v12 = vld [vmem:[#allocation8 + $0x38] sm:$0xff]  ;;  %630 = vmatpush.msrb.mxu1 %v2743_v6 }
  0x9a   :  { %v2100_v8 = vmul.f32 -1.442695, %v206_v7  ;;  %v2101_v26 = vmul.f32 -1.442695, %v247_v14  ;;  %v2745_v7 = vld [vmem:[#allocation8 + $0x50] sm:$0xff]  ;;  %3504 = vst [vmem:[#allocation19_spill] sm:$0xff] %v2755_v12 }
  0x9b   :  { %379 = vmatpush.msrb.mxu2 %v2745_v7  ;;  %611 = vmatpush.msrb.mxu0 %v2745_v7 }
  0x9c   :  { %2193 = vpow2.f32 %v2100_v8  ;;  %v2749_v8 = vld [vmem:[#allocation8 + $0x58] sm:$0xff] }
  0x9d   :  { %399 = vmatpush.msrb.mxu3 %v2749_v8  ;;  %631 = vmatpush.msrb.mxu1 %v2749_v8 }
  0x9f   :  { %400 = vmatpush.msrb.mxu3 %v2755_v12  ;;  %632 = vmatpush.msrb.mxu1 %v2755_v12 }
  0xa2   :  { %v2194_v9 = vpop.eup %2193 }
  0xa3   :  { %v278_v10 = vadd.f32 1.0, %v2194_v9  ;;  %v150_v9 = vld [vmem:[#allocation3 + $0x8] sm:$0xff] }
  0xa4   :  { %2085 = vmatmul.msk.f32.gmra.mxu0 %vm163_vm0, %v150_v9  ;;  %2093 = vmatmul.msk.f32.gmra.mxu1 %vm163_vm0, %v150_v9 }
  0xa5   :  { %2195 = vrcp.f32 %v278_v10  ;;  %v291_v17 = vand.u32 2147483648, %v278_v10  ;;  %v289_v19 = vand.u32 2147483647, %v278_v10  ;;  %vm285_vm2 = vweird.f32 %v278_v10 }
  0xa6   :  { %2197 = vtanh.f32 %v247_v14  ;;  %v2761_v14 = vld [vmem:[#allocation8 + $0x18] sm:$0xff] }
  0xa7   :  { %v292_v22 = vor.u32 1.1754944e-38, %v291_v17  ;;  %vm290_vm4 = vcmp.eq.f32.partialorder %v289_v19, 8.507059e+37  ;;  %2199 = vpow2.f32 %v2101_v26  ;;  %3506 = vst [vmem:[#allocation21_spill] sm:$0xff] %v2761_v14  ;;  %401 = vmatpush.msrb.mxu3 %v2761_v14  ;;  %633 = vmatpush.msrb.mxu1 %v2761_v14 }
  0xa9   :  { %818 = vmatpush.msra.mxu1 %v2653_v30 }
  0xab   :  { %v2196_v13 = vpop.eup %2195  ;;  %819 = vmatpush.msra.mxu1 %v2660_v32 }
  0xac   :  { %v281_v15 = vmul.f32 %v2196_v13, %v278_v10  ;;  %vm286_vm1 = vweird.f32 %v2196_v13  ;;  %v2198_v21 = vpop.eup %2197  ;;  %v2753_v10 = vld [vmem:[#allocation8 + $0x30] sm:$0xff] }
  0xad   :  { %vm287_vm3 = vmor %vm285_vm2, %vm286_vm1  ;;  %v2200_v27 = vpop.eup %2199  ;;  %3503 = vst [vmem:[#allocation18_spill] sm:$0xff] %v2753_v10  ;;  %380 = vmatpush.msrb.mxu2 %v2753_v10  ;;  %612 = vmatpush.msrb.mxu0 %v2753_v10 }
  0xae   :  { %v282_v16 = vsub.f32 1.0, %v281_v15  ;;  %v2649_v28 = vadd.f32 1.0, %v2200_v27  ;;  %820 = vmatpush.msra.mxu1 %v2664_v34 }
  0xb0   :  { %v283_v18 = vmul.f32 %v2196_v13, %v282_v16  ;;  %2201 = vrcp.f32 %v2649_v28  ;;  %vm300_vm5 = vweird.f32 %v2649_v28  ;;  %v306_v60 = vand.u32 2147483648, %v2649_v28  ;;  %821 = vmatpush.msra.mxu1 %v2670_v36 }
  0xb1   :  { %v304_v62 = vand.u32 2147483647, %v2649_v28 }
  0xb2   :  { %v284_v20 = vadd.f32 %v2196_v13, %v283_v18  ;;  %v307_v63 = vor.u32 1.1754944e-38, %v306_v60  ;;  %822 = vmatpush.msra.mxu1 %v2680_v40 }
  0xb3   :  { %vm305_vm8 = vcmp.eq.f32.partialorder %v304_v62, 8.507059e+37 }
  0xb4   :  { %v288_v23 = vsel %vm287_vm3, %v2196_v13, %v284_v20  ;;  %v2759_v13 = vld [vmem:[#allocation8 + $0x10] sm:$0xff]  ;;  %823 = vmatpush.msra.mxu1 %v2692_v45 }
  0xb5   :  { %v2645_v24 = vsel %vm290_vm4, %v292_v22, %v288_v23  ;;  %3505 = vst [vmem:[#allocation20_spill] sm:$0xff] %v2759_v13  ;;  %381 = vmatpush.msrb.mxu2 %v2759_v13  ;;  %613 = vmatpush.msrb.mxu0 %v2759_v13  ;;  %v143_v20 = vld [vmem:[%s3464_s5] sm:$0x3] }
  0xb6   :  { %v312_v25 = vmul.f32 %v2198_v21, %v2645_v24  ;;  %v2202_v41 = vpop.eup %2201  ;;  %v311_v57 = vmul.f32 0.0, %v2645_v24  ;;  %824 = vmatpush.msra.mxu1 %v2705_v50  ;;  %v2799_v22 = vperm.slane %v143_v20, 0 }
  0xb7   :  { %v296_v48 = vmul.f32 %v2202_v41, %v2649_v28  ;;  %vm301_vm6 = vweird.f32 %v2202_v41  ;;  %798 = vmatpush.msra.mxu0 %v2651_v29 }
  0xb8   :  { %314 = vrot.lane.b32.xlu0 %v312_v25, %s2571_s4  ;;  %vm302_vm7 = vmor %vm300_vm5, %vm301_vm6  ;;  %825 = vmatpush.msra.mxu1 %v2717_v54  ;;  %3507 = vst [vmem:[#allocation22_spill] sm:$0xff] %v2799_v22 }
  0xb9   :  { %v297_v55 = vsub.f32 1.0, %v296_v48  ;;  %799 = vmatpush.msra.mxu0 %v2655_v31 }
  0xbb   :  { %v298_v56 = vmul.f32 %v2202_v41, %v297_v55  ;;  %800 = vmatpush.msra.mxu0 %v2662_v33 }
  0xbd   :  { %v299_v61 = vadd.f32 %v2202_v41, %v298_v56  ;;  %801 = vmatpush.msra.mxu0 %v2668_v35  ;;  %v2802_v56 = vperm.slane %v143_v20, 1 }
  0xbf   :  { %v303_v0 = vsel %vm302_vm7, %v2202_v41, %v299_v61  ;;  %802 = vmatpush.msra.mxu0 %v2678_v39  ;;  %3508 = vst [vmem:[#allocation23_spill] sm:$0xff] %v2802_v56 }
  0xc0   :  { %v308_v2 = vsel %vm305_vm8, %v307_v63, %v303_v0 }
  0xc1   :  { %803 = vmatpush.msra.mxu0 %v2690_v44 }
  0xc3   :  { %804 = vmatpush.msra.mxu0 %v2703_v49 }
  0xc5   :  { %805 = vmatpush.msra.mxu0 %v2715_v53 }
 0x121   :  { %v208_v16 = vpop.f32.mrf.mxu0  ;;  %v249_v62 = vpop.f32.mrf.mxu1 }
 0x122   :  { %v209_v17 = vadd.f32 %v208_v16, %v2639_v5 }
 0x12a   :  { %v315_v58 = vpop.permute.xlu0 %314 }
 0x12b   :  { %v2733_v59 = vadd.f32 %v315_v58, %v311_v57 }
 0x12d   :  { %2203 = vtanh.f32 %v2733_v59 }
 0x133   :  { %v2204_v1 = vpop.eup %2203 }
 0x134   :  { %v319_v3 = vmul.f32 %v2204_v1, %v308_v2  ;;  %v250_v2 = vadd.f32 %v249_v62, %v2642_v11 }
 0x136   :  { %321 = vrot.lane.b32.xlu0 %v319_v3, %s2571_s4 }
 0x1a8   :  { %v322_v15 = vpop.permute.xlu0 %321 }
 0x1a9   :  { %2102 = vmatmul.msk.f32.vlgmr.msra.gmra.mxu2 %vm323_vm9, %v322_v15  ;;  %2103 = vmatmul.msk.f32.vlgmr.msra.gmra.mxu3 %vm323_vm9, %v322_v15 }
 0x1b1   :  { %2104 = vmatmul.msk.f32.vlgmr.msrb.gmra.mxu2 %vm323_vm9, %v322_v15  ;;  %2105 = vmatmul.msk.f32.vlgmr.msrb.gmra.mxu3 %vm323_vm9, %v322_v15 }
 0x22c   :  { %v343_v18 = vpop.f32.mrf.mxu2  ;;  %v363_v28 = vpop.f32.mrf.mxu3 }
 0x22d   :  { %v503_v19 = vadd.f32 %v343_v18, %v209_v17  ;;  %v504_v18 = vadd.f32 %v363_v28, %v250_v2 }
 0x22f   :  { %v2110_v21 = vmul.f32 -1.442695, %v503_v19 }
 0x231   :  { %2205 = vpow2.f32 %v2110_v21 }
 0x234   :  { %v383_v23 = vpop.f32.mrf.mxu2  ;;  %v403_v58 = vpop.f32.mrf.mxu3 }
 0x235   :  { %v408_v24 = vadd.f32 %v383_v23, %v2799_v22  ;;  %v409_v61 = vadd.f32 %v403_v58, %v2802_v56  ;;  %v153_v56 = vld [vmem:[#allocation3 + $0x20] sm:$0xff] }
 0x237   :  { %v2206_v25 = vpop.eup %2205  ;;  %v2106_v26 = vmul.f32 -1.442695, %v408_v24  ;;  %v2107_v62 = vmul.f32 -1.442695, %v409_v61 }
 0x238   :  { %v511_v27 = vadd.f32 1.0, %v2206_v25 }
 0x239   :  { %2207 = vpow2.f32 %v2106_v26 }
 0x23a   :  { %2209 = vrcp.f32 %v511_v27  ;;  %v524_v25 = vand.u32 2147483648, %v511_v27  ;;  %vm518_vm15 = vweird.f32 %v511_v27 }
 0x23c   :  { %v525_v58 = vor.u32 1.1754944e-38, %v524_v25  ;;  %v152_v25 = vld [vmem:[#allocation3 + $0x18] sm:$0xff] }
 0x23f   :  { %v2208_v41 = vpop.eup %2207 }
 0x240   :  { %v416_v48 = vadd.f32 1.0, %v2208_v41  ;;  %v2210_v55 = vpop.eup %2209  ;;  %v522_v41 = vand.u32 2147483647, %v511_v27 }
 0x241   :  { %v514_v57 = vmul.f32 %v2210_v55, %v511_v27  ;;  %vm519_vm14 = vweird.f32 %v2210_v55 }
 0x242   :  { %2211 = vrcp.f32 %v416_v48  ;;  %v429_v3 = vand.u32 2147483648, %v416_v48  ;;  %v427_v15 = vand.u32 2147483647, %v416_v48  ;;  %vm423_vm11 = vweird.f32 %v416_v48  ;;  %vm520_vm1 = vmor %vm518_vm15, %vm519_vm14 }
 0x243   :  { %v515_v0 = vsub.f32 1.0, %v514_v57  ;;  %2213 = vtanh.f32 %v409_v61  ;;  %vm523_vm2 = vcmp.eq.f32.partialorder %v522_v41, 8.507059e+37  ;;  %v2821_v61 = vld [vmem:[#allocation9 + $0x70] sm:$0xff] }
 0x244   :  { %v430_v19 = vor.u32 1.1754944e-38, %v429_v3  ;;  %vm428_vm13 = vcmp.eq.f32.partialorder %v427_v15, 8.507059e+37  ;;  %2215 = vtanh.f32 %v504_v18  ;;  %v151_v3 = vld [vmem:[#allocation3 + $0x10] sm:$0xff]  ;;  %471 = vmatpush.msra.mxu2 %v2821_v61  ;;  %v2847_v41 = vld [vmem:[#allocation9 + $0x30] sm:$0xff] }
 0x245   :  { %v516_v16 = vmul.f32 %v2210_v55, %v515_v0  ;;  %2217 = vpow2.f32 %v2107_v62  ;;  %2086 = vmatmul.msk.f32.gmra.mxu0 %vm163_vm0, %v151_v3  ;;  %2094 = vmatmul.msk.f32.gmra.mxu1 %vm163_vm0, %v151_v3  ;;  %v2825_v15 = vld [vmem:[#allocation9 + $0x60] sm:$0xff] }
 0x246   :  { %472 = vmatpush.msra.mxu2 %v2825_v15 }
 0x247   :  { %v517_v21 = vadd.f32 %v2210_v55, %v516_v16 }
 0x248   :  { %v2212_v60 = vpop.eup %2211 }
 0x249   :  { %v419_v63 = vmul.f32 %v2212_v60, %v416_v48  ;;  %vm424_vm10 = vweird.f32 %v2212_v60  ;;  %v2214_v23 = vpop.eup %2213  ;;  %v521_v57 = vsel %vm520_vm1, %v2210_v55, %v517_v21  ;;  %v2841_v21 = vld [vmem:[#allocation9 + $0x48] sm:$0xff] }
 0x24a   :  { %vm425_vm12 = vmor %vm423_vm11, %vm424_vm10  ;;  %v2807_v28 = vsel %vm523_vm2, %v525_v58, %v521_v57  ;;  %v2216_v48 = vpop.eup %2215  ;;  %v2849_v57 = vld [vmem:[#allocation9 + $0x38] sm:$0xff]  ;;  %v2855_v58 = vld [vmem:[#allocation9 + $0x20] sm:$0xff] }
 0x24b   :  { %v420_v1 = vsub.f32 1.0, %v419_v63  ;;  %v2111_v63 = vmul.f32 -1.442695, %v504_v18  ;;  %v2218_v0 = vpop.eup %2217  ;;  %v2833_v18 = vld [vmem:[#allocation9 + $0x50] sm:$0xff] }
 0x24c   :  { %v2811_v27 = vadd.f32 1.0, %v2218_v0  ;;  %473 = vmatpush.msra.mxu2 %v2833_v18  ;;  %v2864_v0 = vld [vmem:[#allocation9 + $0x10] sm:$0xff] }
 0x24d   :  { %v421_v9 = vmul.f32 %v2212_v60, %v420_v1  ;;  %2219 = vpow2.f32 %v2111_v63  ;;  %2087 = vmatmul.msk.f32.gmra.mxu0 %vm163_vm0, %v152_v25  ;;  %2095 = vmatmul.msk.f32.gmra.mxu1 %vm163_vm0, %v152_v25  ;;  %3509 = vst [vmem:[#allocation24_spill] sm:$0xff] %v2864_v0  ;;  %v2874_v25 = vld [vmem:[#allocation9 + $0x8] sm:$0xff] }
 0x24e   :  { %2221 = vrcp.f32 %v2811_v27  ;;  %3513 = vst [vmem:[#allocation28_spill] sm:$0xff] %v2874_v25  ;;  %v444_v5 = vand.u32 2147483648, %v2811_v27  ;;  %vm438_vm4 = vweird.f32 %v2811_v27 }
 0x24f   :  { %v422_v17 = vadd.f32 %v2212_v60, %v421_v9  ;;  %v2823_v9 = vld [vmem:[#allocation9 + $0x78] sm:$0xff] }
 0x250   :  { %491 = vmatpush.msra.mxu3 %v2823_v9 }
 0x251   :  { %v426_v20 = vsel %vm425_vm12, %v2212_v60, %v422_v17  ;;  %v545_v60 = vmul.f32 %v2216_v48, %v2807_v28  ;;  %v2831_v17 = vld [vmem:[#allocation9 + $0x68] sm:$0xff] }
 0x252   :  { %v431_v24 = vsel %vm428_vm13, %v430_v19, %v426_v20  ;;  %v2835_v19 = vld [vmem:[#allocation9 + $0x58] sm:$0xff]  ;;  %492 = vmatpush.msra.mxu3 %v2831_v17  ;;  %v2839_v20 = vld [vmem:[#allocation9 + $0x40] sm:$0xff]  ;;  %v2857_v48 = vld [vmem:[#allocation9 + $0x28] sm:$0xff] }
 0x253   :  { %v450_v26 = vmul.f32 %v2214_v23, %v431_v24  ;;  %v2220_v1 = vpop.eup %2219  ;;  %474 = vmatpush.msra.mxu2 %v2839_v20  ;;  %v449_v63 = vmul.f32 0.0, %v431_v24 }
 0x254   :  { %v2814_v55 = vadd.f32 1.0, %v2220_v1  ;;  %v2816_v2 = vpop.eup %2221  ;;  %493 = vmatpush.msra.mxu3 %v2835_v19  ;;  %v2866_v1 = vld [vmem:[#allocation9 + $0x18] sm:$0xff] }
 0x255   :  { %452 = vrot.lane.b32.xlu1 %v450_v26, %s2571_s4  ;;  %v434_v16 = vmul.f32 %v2816_v2, %v2811_v27  ;;  %475 = vmatpush.msra.mxu2 %v2847_v41  ;;  %3510 = vst [vmem:[#allocation25_spill] sm:$0xff] %v2866_v1  ;;  %vm439_vm3 = vweird.f32 %v2816_v2 }
 0x256   :  { %2223 = vrcp.f32 %v2814_v55  ;;  %494 = vmatpush.msra.mxu3 %v2841_v21  ;;  %vm2886_vm5 = vmor %vm438_vm4, %vm439_vm3  ;;  %2088 = vmatmul.msk.f32.gmra.mxu0 %vm163_vm0, %v153_v56  ;;  %vm533_vm8 = vweird.f32 %v2814_v55 }
 0x257   :  { %v435_v23 = vsub.f32 1.0, %v434_v16  ;;  %476 = vmatpush.msra.mxu2 %v2855_v58  ;;  %2096 = vmatmul.msk.f32.gmra.mxu1 %vm163_vm0, %v153_v56 }
 0x258   :  { %495 = vmatpush.msra.mxu3 %v2849_v57 }
 0x259   :  { %477 = vmatpush.msra.mxu2 %v2864_v0 }
 0x25a   :  { %496 = vmatpush.msra.mxu3 %v2857_v48 }
 0x25c   :  { %v2845_v26 = vpop.eup %2223  ;;  %497 = vmatpush.msra.mxu3 %v2866_v1 }
 0x25d   :  { %547 = vrot.lane.b32.xlu1 %v545_v60, %s2571_s4  ;;  %v436_v60 = vmul.f32 %v2816_v2, %v435_v23  ;;  %v529_v62 = vmul.f32 %v2845_v26, %v2814_v55  ;;  %v2872_v23 = vld [vmem:[#allocation9] sm:$0xff]  ;;  %vm534_vm7 = vweird.f32 %v2845_v26 }
 0x25e   :  { %3512 = vst [vmem:[#allocation27_spill] sm:$0xff] %v2872_v23  ;;  %478 = vmatpush.msra.mxu2 %v2872_v23  ;;  %498 = vmatpush.msra.mxu3 %v2874_v25  ;;  %vm535_vm10 = vmor %vm533_vm8, %vm534_vm7 }
 0x25f   :  { %v437_v11 = vadd.f32 %v2816_v2, %v436_v60  ;;  %v530_v24 = vsub.f32 1.0, %v529_v62  ;;  %v154_v60 = vld [vmem:[#allocation3 + $0x28] sm:$0xff] }
 0x260   :  { %566 = vmatpush.msrb.mxu2 %v2651_v29  ;;  %586 = vmatpush.msrb.mxu3 %v2653_v30 }
 0x261   :  { %v441_v62 = vsel %vm2886_vm5, %v2816_v2, %v437_v11  ;;  %2089 = vmatmul.msk.f32.gmra.mxu0 %vm163_vm0, %v154_v60  ;;  %2097 = vmatmul.msk.f32.gmra.mxu1 %vm163_vm0, %v154_v60 }
 0x262   :  { %567 = vmatpush.msrb.mxu2 %v2655_v31  ;;  %587 = vmatpush.msrb.mxu3 %v2660_v32 }
 0x264   :  { %568 = vmatpush.msrb.mxu2 %v2662_v33  ;;  %588 = vmatpush.msrb.mxu3 %v2664_v34 }
 0x266   :  { %569 = vmatpush.msrb.mxu2 %v2668_v35  ;;  %589 = vmatpush.msrb.mxu3 %v2670_v36 }
 0x268   :  { %570 = vmatpush.msrb.mxu2 %v2678_v39  ;;  %590 = vmatpush.msrb.mxu3 %v2680_v40 }
 0x26a   :  { %571 = vmatpush.msrb.mxu2 %v2690_v44  ;;  %591 = vmatpush.msrb.mxu3 %v2692_v45 }
 0x26c   :  { %572 = vmatpush.msrb.mxu2 %v2703_v49  ;;  %592 = vmatpush.msrb.mxu3 %v2705_v50 }
 0x26e   :  { %573 = vmatpush.msrb.mxu2 %v2715_v53  ;;  %593 = vmatpush.msrb.mxu3 %v2717_v54 }
 0x2c7   :  { %v453_v3 = vpop.permute.xlu1 %452 }
 0x2c8   :  { %v2870_v16 = vadd.f32 %v453_v3, %v449_v63  ;;  %v442_v63 = vand.u32 2147483647, %v2811_v27  ;;  %v531_v3 = vmul.f32 %v2845_v26, %v530_v24  ;;  %v544_v27 = vmul.f32 %v2807_v28, %v2733_v59 }
 0x2c9   :  { %v537_v59 = vand.u32 2147483647, %v2814_v55 }
 0x2ca   :  { %3511 = vst [vmem:[#allocation26_spill] sm:$0xff] %v2870_v16  ;;  %2225 = vtanh.f32 %v2870_v16  ;;  %v445_v16 = vor.u32 1.1754944e-38, %v444_v5  ;;  %vm443_vm6 = vcmp.eq.f32.partialorder %v442_v63, 8.507059e+37  ;;  %v532_v24 = vadd.f32 %v2845_v26, %v531_v3 }
 0x2cb   :  { %v539_v5 = vand.u32 2147483648, %v2814_v55  ;;  %vm538_vm11 = vcmp.eq.f32.partialorder %v537_v59, 8.507059e+37 }
 0x2cc   :  { %v446_v11 = vsel %vm443_vm6, %v445_v16, %v441_v62  ;;  %v155_v62 = vld [vmem:[#allocation3 + $0x30] sm:$0xff] }
 0x2cd   :  { %v540_v28 = vor.u32 1.1754944e-38, %v539_v5  ;;  %2090 = vmatmul.msk.f32.gmra.mxu0 %vm163_vm0, %v155_v62  ;;  %2098 = vmatmul.msk.f32.gmra.mxu1 %vm163_vm0, %v155_v62 }
 0x2cf   :  { %v548_v22 = vpop.permute.xlu1 %547 }
 0x2d0   :  { %v2226_v56 = vpop.eup %2225  ;;  %v2902_v14 = vadd.f32 %v548_v22, %v544_v27  ;;  %v536_v22 = vsel %vm535_vm10, %v2845_v26, %v532_v24  ;;  %v156_v26 = vld [vmem:[#allocation3 + $0x38] sm:$0xff]  ;;  %v252_v24 = vpop.f32.mrf.mxu1 }
 0x2d1   :  { %v457_v2 = vmul.f32 %v2226_v56, %v446_v11  ;;  %v541_v16 = vsel %vm538_vm11, %v540_v28, %v536_v22  ;;  %v3516_v56 = vld [vmem:[#allocation21_spill] sm:$0xff]  ;;  %v211_v11 = vpop.f32.mrf.mxu0 }
 0x2d2   :  { %2227 = vtanh.f32 %v2902_v14 }
 0x2d3   :  { %459 = vrot.lane.b32.xlu2 %v457_v2, %s2571_s4 }
 0x2d5   :  { %2091 = vmatmul.msk.f32.gmra.mxu0 %vm163_vm0, %v156_v26  ;;  %2099 = vmatmul.msk.f32.gmra.mxu1 %vm163_vm0, %v156_v26 }
 0x2d8   :  { %v2228_v55 = vpop.eup %2227  ;;  %v2989_v5 = vpop.f32.mrf.mxu1 }
 0x2d9   :  { %v552_v63 = vmul.f32 %v2228_v55, %v541_v16  ;;  %v2985_v2 = vpop.f32.mrf.mxu0  ;;  %3519 = vst [vmem:[#allocation31_spill] sm:$0xff] %v2989_v5 }
 0x2da   :  { %3517 = vst [vmem:[#allocation29_spill] sm:$0xff] %v2985_v2 }
 0x2db   :  { %554 = vrot.lane.b32.xlu2 %v552_v63, %s2571_s4 }
 0x2e0   :  { %v2993_v22 = vpop.f32.mrf.mxu1 }
 0x2e1   :  { %v2987_v60 = vpop.f32.mrf.mxu0  ;;  %3521 = vst [vmem:[#allocation33_spill] sm:$0xff] %v2993_v22 }
 0x2e2   :  { %3518 = vst [vmem:[#allocation30_spill] sm:$0xff] %v2987_v60  ;;  %v3527_v60 = vld [vmem:[#allocation16_spill] sm:$0xff] }
 0x2e8   :  { %v2997_v55 = vpop.f32.mrf.mxu1 }
 0x2e9   :  { %v2991_v59 = vpop.f32.mrf.mxu0  ;;  %3523 = vst [vmem:[#allocation35_spill] sm:$0xff] %v2997_v55 }
 0x2ea   :  { %3520 = vst [vmem:[#allocation32_spill] sm:$0xff] %v2991_v59 }
 0x32d   :  { %v460_v3 = vpop.permute.xlu2 %459 }
 0x32e   :  { %2108 = vmatmul.msk.f32.vlgmr.msra.gmra.mxu2 %vm323_vm9, %v460_v3  ;;  %2109 = vmatmul.msk.f32.vlgmr.msra.gmra.mxu3 %vm323_vm9, %v460_v3 }
 0x32f   :  { %703 = vmatpush.msra.mxu2 %v2821_v61  ;;  %723 = vmatpush.msra.mxu3 %v2823_v9 }
 0x331   :  { %704 = vmatpush.msra.mxu2 %v2825_v15  ;;  %724 = vmatpush.msra.mxu3 %v2831_v17 }
 0x333   :  { %705 = vmatpush.msra.mxu2 %v2833_v18  ;;  %725 = vmatpush.msra.mxu3 %v2835_v19 }
 0x335   :  { %v555_v27 = vpop.permute.xlu2 %554  ;;  %706 = vmatpush.msra.mxu2 %v2839_v20  ;;  %726 = vmatpush.msra.mxu3 %v2841_v21 }
 0x336   :  { %2112 = vmatmul.msk.f32.vlgmr.msrb.gmra.mxu2 %vm323_vm9, %v555_v27  ;;  %2113 = vmatmul.msk.f32.vlgmr.msrb.gmra.mxu3 %vm323_vm9, %v555_v27 }
 0x337   :  { %2114 = vmatmul.msk.f32.vlgmr.msrb.gmra.mxu0 %vm323_vm9, %v555_v27  ;;  %2115 = vmatmul.msk.f32.vlgmr.msrb.gmra.mxu1 %vm323_vm9, %v555_v27  ;;  %v3526_v27 = vld [vmem:[#allocation22_spill] sm:$0xff] }
 0x338   :  { %707 = vmatpush.msra.mxu2 %v2847_v41  ;;  %727 = vmatpush.msra.mxu3 %v2849_v57 }
 0x339   :  { %935 = vmatpush.msrb.mxu0 %v2821_v61  ;;  %955 = vmatpush.msrb.mxu1 %v2823_v9 }
 0x33a   :  { %708 = vmatpush.msra.mxu2 %v2855_v58  ;;  %728 = vmatpush.msra.mxu3 %v2857_v48 }
 0x33b   :  { %936 = vmatpush.msrb.mxu0 %v2825_v15  ;;  %956 = vmatpush.msrb.mxu1 %v2831_v17 }
 0x33c   :  { %709 = vmatpush.msra.mxu2 %v2864_v0  ;;  %729 = vmatpush.msra.mxu3 %v2866_v1 }
 0x33d   :  { %937 = vmatpush.msrb.mxu0 %v2833_v18  ;;  %957 = vmatpush.msrb.mxu1 %v2835_v19 }
 0x33e   :  { %710 = vmatpush.msra.mxu2 %v2872_v23  ;;  %730 = vmatpush.msra.mxu3 %v2874_v25 }
 0x33f   :  { %938 = vmatpush.msrb.mxu0 %v2839_v20  ;;  %958 = vmatpush.msrb.mxu1 %v2841_v21 }
 0x340   :  { %838 = vmatpush.msrb.mxu2 %v2674_v37  ;;  %858 = vmatpush.msrb.mxu3 %v2676_v38 }
 0x341   :  { %939 = vmatpush.msrb.mxu0 %v2847_v41  ;;  %959 = vmatpush.msrb.mxu1 %v2849_v57 }
 0x342   :  { %839 = vmatpush.msrb.mxu2 %v2686_v42  ;;  %859 = vmatpush.msrb.mxu3 %v2688_v43 }
 0x343   :  { %940 = vmatpush.msrb.mxu0 %v2855_v58  ;;  %960 = vmatpush.msrb.mxu1 %v2857_v48 }
 0x344   :  { %840 = vmatpush.msrb.mxu2 %v2698_v46  ;;  %860 = vmatpush.msrb.mxu3 %v2700_v47 }
 0x345   :  { %941 = vmatpush.msrb.mxu0 %v2864_v0  ;;  %961 = vmatpush.msrb.mxu1 %v2866_v1 }
 0x346   :  { %841 = vmatpush.msrb.mxu2 %v2711_v51  ;;  %861 = vmatpush.msrb.mxu3 %v2713_v52 }
 0x347   :  { %942 = vmatpush.msrb.mxu0 %v2872_v23  ;;  %962 = vmatpush.msrb.mxu1 %v2874_v25  ;;  %v212_v25 = vadd.f32 %v211_v11, %v3527_v60 }
 0x348   :  { %842 = vmatpush.msrb.mxu2 %v2741_v4  ;;  %862 = vmatpush.msrb.mxu3 %v2743_v6 }
 0x34a   :  { %843 = vmatpush.msrb.mxu2 %v2745_v7  ;;  %863 = vmatpush.msrb.mxu3 %v2749_v8  ;;  %v2995_v28 = vpop.f32.mrf.mxu0  ;;  %v3001_v63 = vpop.f32.mrf.mxu1 }
 0x34b   :  { %3522 = vst [vmem:[#allocation34_spill] sm:$0xff] %v2995_v28 }
 0x34c   :  { %844 = vmatpush.msrb.mxu2 %v2753_v10  ;;  %864 = vmatpush.msrb.mxu3 %v2755_v12  ;;  %3525 = vst [vmem:[#allocation37_spill] sm:$0xff] %v3001_v63 }
 0x34e   :  { %845 = vmatpush.msrb.mxu2 %v2759_v13  ;;  %865 = vmatpush.msrb.mxu3 %v3516_v56 }
 0x352   :  { %v2999_v16 = vpop.f32.mrf.mxu0  ;;  %v3005_v5 = vpop.f32.mrf.mxu1 }
 0x353   :  { %3524 = vst [vmem:[#allocation36_spill] sm:$0xff] %v2999_v16 }
 0x354   :  { %3528 = vst [vmem:[#allocation38_spill] sm:$0xff] %v3005_v5  ;;  %v3530_v5 = vld [vmem:[#allocation17_spill] sm:$0xff] }
 0x3b1   :  { %v480_v62 = vpop.f32.mrf.mxu2  ;;  %v500_v55 = vpop.f32.mrf.mxu3 }
 0x3b4   :  { %v615_v26 = vpop.f32.mrf.mxu0  ;;  %v635_v13 = vpop.f32.mrf.mxu1 }
 0x3b5   :  { %v638_v3 = vadd.f32 %v615_v26, %v480_v62  ;;  %v639_v62 = vadd.f32 %v635_v13, %v500_v55 }
 0x3b7   :  { %v640_v2 = vadd.f32 %v638_v3, %v3526_v27  ;;  %v3529_v3 = vld [vmem:[#allocation23_spill] sm:$0xff] }
 0x3b8   :  { %v641_v11 = vadd.f32 %v639_v62, %v3529_v3 }
 0x3b9   :  { %v2116_v59 = vmul.f32 -1.442695, %v640_v2  ;;  %v575_v23 = vpop.f32.mrf.mxu2  ;;  %v595_v27 = vpop.f32.mrf.mxu3  ;;  %v253_v2 = vadd.f32 %v252_v24, %v3530_v5 }
 0x3ba   :  { %v735_v22 = vadd.f32 %v575_v23, %v212_v25 }
 0x3bb   :  { %2229 = vpow2.f32 %v2116_v59  ;;  %v736_v25 = vadd.f32 %v595_v27, %v253_v2 }
 0x3bc   :  { %v2120_v28 = vmul.f32 -1.442695, %v735_v22 }
 0x3be   :  { %2231 = vpow2.f32 %v2120_v28 }
 0x3c1   :  { %v2230_v56 = vpop.eup %2229 }
 0x3c2   :  { %v648_v16 = vadd.f32 1.0, %v2230_v56 }
 0x3c4   :  { %v2232_v63 = vpop.eup %2231  ;;  %2233 = vrcp.f32 %v648_v16  ;;  %v661_v28 = vand.u32 2147483648, %v648_v16  ;;  %v659_v0 = vand.u32 2147483647, %v648_v16  ;;  %vm655_vm12 = vweird.f32 %v648_v16 }
 0x3c5   :  { %v743_v1 = vadd.f32 1.0, %v2232_v63 }
 0x3c6   :  { %v662_v63 = vor.u32 1.1754944e-38, %v661_v28  ;;  %vm660_vm15 = vcmp.eq.f32.partialorder %v659_v0, 8.507059e+37  ;;  %v2121_v28 = vmul.f32 -1.442695, %v736_v25 }
 0x3c7   :  { %2235 = vrcp.f32 %v743_v1  ;;  %v756_v55 = vand.u32 2147483648, %v743_v1  ;;  %v754_v24 = vand.u32 2147483647, %v743_v1  ;;  %vm750_vm1 = vweird.f32 %v743_v1 }
 0x3c8   :  { %2237 = vtanh.f32 %v641_v11 }
 0x3c9   :  { %2239 = vtanh.f32 %v736_v25  ;;  %vm755_vm3 = vcmp.eq.f32.partialorder %v754_v24, 8.507059e+37  ;;  %v3531_v24 = vld [vmem:[#allocation26_spill] sm:$0xff] }
 0x3ca   :  { %v2234_v26 = vpop.eup %2233 }
 0x3cb   :  { %v651_v60 = vmul.f32 %v2234_v26, %v648_v16  ;;  %vm656_vm0 = vweird.f32 %v2234_v26 }
 0x3cc   :  { %vm657_vm13 = vmor %vm655_vm12, %vm656_vm0 }
 0x3cd   :  { %v2236_v23 = vpop.eup %2235  ;;  %v652_v59 = vsub.f32 1.0, %v651_v60 }
 0x3ce   :  { %v746_v22 = vmul.f32 %v2236_v23, %v743_v1  ;;  %vm751_vm14 = vweird.f32 %v2236_v23  ;;  %v2238_v27 = vpop.eup %2237 }
 0x3cf   :  { %v653_v56 = vmul.f32 %v2234_v26, %v652_v59  ;;  %vm752_vm2 = vmor %vm750_vm1, %vm751_vm14  ;;  %v757_v59 = vor.u32 1.1754944e-38, %v756_v55 }
 0x3d0   :  { %v747_v12 = vsub.f32 1.0, %v746_v22  ;;  %v2240_v22 = vpop.eup %2239 }
 0x3d1   :  { %v654_v13 = vadd.f32 %v2234_v26, %v653_v56 }
 0x3d2   :  { %v748_v62 = vmul.f32 %v2236_v23, %v747_v12  ;;  %v2117_v12 = vmul.f32 -1.442695, %v641_v11 }
 0x3d3   :  { %v658_v3 = vsel %vm657_vm13, %v2234_v26, %v654_v13 }
 0x3d4   :  { %v663_v60 = vsel %vm660_vm15, %v662_v63, %v658_v3  ;;  %v749_v2 = vadd.f32 %v2236_v23, %v748_v62  ;;  %2241 = vpow2.f32 %v2117_v12 }
 0x3d5   :  { %v682_v5 = vmul.f32 %v2238_v27, %v663_v60  ;;  %2243 = vpow2.f32 %v2121_v28  ;;  %v681_v27 = vmul.f32 %v663_v60, %v3531_v24 }
 0x3d6   :  { %v753_v10 = vsel %vm752_vm2, %v2236_v23, %v749_v2 }
 0x3d7   :  { %684 = vrot.lane.b32.xlu0 %v682_v5, %s2571_s4  ;;  %v758_v16 = vsel %vm755_vm3, %v757_v59, %v753_v10 }
 0x3d8   :  { %v777_v56 = vmul.f32 %v2240_v22, %v758_v16  ;;  %v776_v59 = vmul.f32 %v758_v16, %v2902_v14 }
 0x3da   :  { %779 = vrot.lane.b32.xlu1 %v777_v56, %s2571_s4  ;;  %v2242_v0 = vpop.eup %2241 }
 0x3db   :  { %v2244_v26 = vpop.eup %2243  ;;  %v649_v3 = vadd.f32 1.0, %v2242_v0 }
 0x3dc   :  { %v744_v1 = vadd.f32 1.0, %v2244_v26 }
 0x3dd   :  { %2245 = vrcp.f32 %v649_v3  ;;  %v676_v12 = vand.u32 2147483648, %v649_v3  ;;  %vm670_vm5 = vweird.f32 %v649_v3  ;;  %v674_v0 = vand.u32 2147483647, %v649_v3 }
 0x3de   :  { %2247 = vrcp.f32 %v744_v1  ;;  %vm765_vm8 = vweird.f32 %v744_v1  ;;  %v769_v14 = vand.u32 2147483647, %v744_v1 }
 0x3df   :  { %vm675_vm10 = vcmp.eq.f32.partialorder %v674_v0, 8.507059e+37 }
 0x3e0   :  { %vm770_vm0 = vcmp.eq.f32.partialorder %v769_v14, 8.507059e+37 }
 0x3e3   :  { %v2246_v13 = vpop.eup %2245 }
 0x3e4   :  { %v2248_v23 = vpop.eup %2247  ;;  %v666_v55 = vmul.f32 %v2246_v13, %v649_v3  ;;  %vm671_vm4 = vweird.f32 %v2246_v13 }
 0x3e5   :  { %v761_v63 = vmul.f32 %v2248_v23, %v744_v1  ;;  %vm672_vm6 = vmor %vm670_vm5, %vm671_vm4  ;;  %vm766_vm7 = vweird.f32 %v2248_v23 }
 0x3e6   :  { %v667_v62 = vsub.f32 1.0, %v666_v55  ;;  %v771_v55 = vand.u32 2147483648, %v744_v1  ;;  %vm767_vm11 = vmor %vm765_vm8, %vm766_vm7 }
 0x3e7   :  { %v762_v5 = vsub.f32 1.0, %v761_v63  ;;  %v677_v63 = vor.u32 1.1754944e-38, %v676_v12 }
 0x3e8   :  { %v668_v10 = vmul.f32 %v2246_v13, %v667_v62  ;;  %v772_v24 = vor.u32 1.1754944e-38, %v771_v55 }
 0x3e9   :  { %v763_v25 = vmul.f32 %v2248_v23, %v762_v5 }
 0x3ea   :  { %v669_v22 = vadd.f32 %v2246_v13, %v668_v10 }
 0x3eb   :  { %v764_v26 = vadd.f32 %v2248_v23, %v763_v25 }
 0x3ec   :  { %v673_v60 = vsel %vm672_vm6, %v2246_v13, %v669_v22 }
 0x3ed   :  { %v678_v62 = vsel %vm675_vm10, %v677_v63, %v673_v60  ;;  %v768_v5 = vsel %vm767_vm11, %v2248_v23, %v764_v26 }
 0x3ee   :  { %v773_v3 = vsel %vm770_vm0, %v772_v24, %v768_v5  ;;  %v3545_v24 = vld [vmem:[#allocation23_spill] sm:$0xff] }
 0x449   :  { %v685_v2 = vpop.permute.xlu0 %684 }
 0x44a   :  { %v3012_v11 = vadd.f32 %v685_v2, %v681_v27 }
 0x44c   :  { %2249 = vtanh.f32 %v3012_v11  ;;  %v780_v56 = vpop.permute.xlu1 %779 }
 0x44d   :  { %v3016_v28 = vadd.f32 %v780_v56, %v776_v59 }
 0x44f   :  { %2251 = vtanh.f32 %v3016_v28 }
 0x452   :  { %v2250_v16 = vpop.eup %2249 }
 0x453   :  { %v689_v10 = vmul.f32 %v2250_v16, %v678_v62 }
 0x455   :  { %v2252_v27 = vpop.eup %2251  ;;  %691 = vrot.lane.b32.xlu2 %v689_v10, %s2571_s4 }
 0x456   :  { %v784_v2 = vmul.f32 %v2252_v27, %v773_v3 }
 0x458   :  { %786 = vrot.lane.b32.xlu0 %v784_v2, %s2571_s4 }
 0x4af   :  { %v692_v13 = vpop.permute.xlu2 %691 }
 0x4b0   :  { %2118 = vmatmul.msk.f32.vlgmr.msra.gmra.mxu2 %vm323_vm9, %v692_v13  ;;  %2119 = vmatmul.msk.f32.vlgmr.msra.gmra.mxu3 %vm323_vm9, %v692_v13 }
 0x4b1   :  { %1030 = vmatpush.msra.mxu2 %v2651_v29  ;;  %1050 = vmatpush.msra.mxu3 %v2653_v30  ;;  %v3532_v30 = vld [vmem:[#allocation18_spill] sm:$0xff] }
 0x4b3   :  { %1031 = vmatpush.msra.mxu2 %v2655_v31  ;;  %1051 = vmatpush.msra.mxu3 %v2660_v32  ;;  %v3533_v31 = vld [vmem:[#allocation19_spill] sm:$0xff]  ;;  %v3534_v32 = vld [vmem:[#allocation24_spill] sm:$0xff] }
 0x4b5   :  { %1032 = vmatpush.msra.mxu2 %v2662_v33  ;;  %1052 = vmatpush.msra.mxu3 %v2664_v34  ;;  %v3535_v33 = vld [vmem:[#allocation25_spill] sm:$0xff]  ;;  %v3536_v34 = vld [vmem:[#allocation20_spill] sm:$0xff] }
 0x4b7   :  { %1033 = vmatpush.msra.mxu2 %v2668_v35  ;;  %1053 = vmatpush.msra.mxu3 %v2670_v36  ;;  %v3537_v35 = vld [vmem:[#allocation21_spill] sm:$0xff]  ;;  %v3538_v36 = vld [vmem:[#allocation27_spill] sm:$0xff] }
 0x4b9   :  { %1034 = vmatpush.msra.mxu2 %v2678_v39  ;;  %1054 = vmatpush.msra.mxu3 %v2680_v40  ;;  %v3541_v39 = vld [vmem:[#allocation29_spill] sm:$0xff] }
 0x4bb   :  { %1035 = vmatpush.msra.mxu2 %v2690_v44  ;;  %1055 = vmatpush.msra.mxu3 %v2692_v45 }
 0x4bd   :  { %1036 = vmatpush.msra.mxu2 %v2703_v49  ;;  %1056 = vmatpush.msra.mxu3 %v2705_v50  ;;  %v3542_v49 = vld [vmem:[#allocation22_spill] sm:$0xff] }
 0x4bf   :  { %1037 = vmatpush.msra.mxu2 %v2715_v53  ;;  %1057 = vmatpush.msra.mxu3 %v2717_v54 }
 0x4ca   :  { %v787_v29 = vpop.permute.xlu0 %786 }
 0x4cb   :  { %2122 = vmatmul.msk.f32.vlgmr.msra.gmra.mxu0 %vm323_vm9, %v787_v29  ;;  %2123 = vmatmul.msk.f32.vlgmr.msra.gmra.mxu1 %vm323_vm9, %v787_v29 }
 0x4cc   :  { %2124 = vmatmul.msk.f32.vlgmr.msrb.gmra.mxu2 %vm323_vm9, %v787_v29  ;;  %2125 = vmatmul.msk.f32.vlgmr.msrb.gmra.mxu3 %vm323_vm9, %v787_v29 }
 0x4cd   :  { %1070 = vmatpush.msra.mxu0 %v2674_v37  ;;  %1090 = vmatpush.msra.mxu1 %v2676_v38  ;;  %v3539_v37 = vld [vmem:[#allocation28_spill] sm:$0xff] }
 0x4ce   :  { %1167 = vmatpush.msrb.mxu2 %v2821_v61  ;;  %1187 = vmatpush.msrb.mxu3 %v2823_v9  ;;  %v3540_v38 = vld [vmem:[#allocation16_spill] sm:$0xff] }
 0x4cf   :  { %1071 = vmatpush.msra.mxu0 %v2686_v42  ;;  %1091 = vmatpush.msra.mxu1 %v2688_v43  ;;  %v215_v40 = vadd.f32 %v3541_v39, %v3540_v38 }
 0x4d0   :  { %1168 = vmatpush.msrb.mxu2 %v2825_v15  ;;  %1188 = vmatpush.msrb.mxu3 %v2831_v17 }
 0x4d1   :  { %1072 = vmatpush.msra.mxu0 %v2698_v46  ;;  %1092 = vmatpush.msra.mxu1 %v2700_v47 }
 0x4d2   :  { %1169 = vmatpush.msrb.mxu2 %v2833_v18  ;;  %1189 = vmatpush.msrb.mxu3 %v2835_v19 }
 0x4d3   :  { %1073 = vmatpush.msra.mxu0 %v2711_v51  ;;  %1093 = vmatpush.msra.mxu1 %v2713_v52 }
 0x4d4   :  { %1170 = vmatpush.msrb.mxu2 %v2839_v20  ;;  %1190 = vmatpush.msrb.mxu3 %v2841_v21 }
 0x4d5   :  { %1074 = vmatpush.msra.mxu0 %v2741_v4  ;;  %1094 = vmatpush.msra.mxu1 %v2743_v6  ;;  %v3543_v6 = vld [vmem:[#allocation17_spill] sm:$0xff] }
 0x4d6   :  { %1171 = vmatpush.msrb.mxu2 %v2847_v41  ;;  %1191 = vmatpush.msrb.mxu3 %v2849_v57 }
 0x4d7   :  { %1075 = vmatpush.msra.mxu0 %v2745_v7  ;;  %1095 = vmatpush.msra.mxu1 %v2749_v8  ;;  %v3544_v7 = vld [vmem:[#allocation31_spill] sm:$0xff] }
 0x4d8   :  { %1172 = vmatpush.msrb.mxu2 %v2855_v58  ;;  %1192 = vmatpush.msrb.mxu3 %v2857_v48  ;;  %v256_v8 = vadd.f32 %v3544_v7, %v3543_v6 }
 0x4d9   :  { %1076 = vmatpush.msra.mxu0 %v3532_v30  ;;  %1096 = vmatpush.msra.mxu1 %v3533_v31 }
 0x4da   :  { %1173 = vmatpush.msrb.mxu2 %v3534_v32  ;;  %1193 = vmatpush.msrb.mxu3 %v3535_v33 }
 0x4db   :  { %1077 = vmatpush.msra.mxu0 %v3536_v34  ;;  %1097 = vmatpush.msra.mxu1 %v3537_v35 }
 0x4dc   :  { %1174 = vmatpush.msrb.mxu2 %v3538_v36  ;;  %1194 = vmatpush.msrb.mxu3 %v3539_v37 }
 0x533   :  { %v712_v42 = vpop.f32.mrf.mxu2  ;;  %v732_v54 = vpop.f32.mrf.mxu3 }
 0x548   :  { %v807_v43 = vpop.f32.mrf.mxu0  ;;  %v827_v4 = vpop.f32.mrf.mxu1 }
 0x549   :  { %v967_v44 = vadd.f32 %v807_v43, %v215_v40  ;;  %v968_v23 = vadd.f32 %v827_v4, %v256_v8 }
 0x54b   :  { %v2130_v45 = vmul.f32 -1.442695, %v967_v44  ;;  %v2131_v44 = vmul.f32 -1.442695, %v968_v23 }
 0x54d   :  { %2253 = vpow2.f32 %v2130_v45 }
 0x54f   :  { %v847_v46 = vpop.f32.mrf.mxu2  ;;  %v867_v12 = vpop.f32.mrf.mxu3 }
 0x550   :  { %v870_v47 = vadd.f32 %v847_v46, %v712_v42  ;;  %v871_v55 = vadd.f32 %v867_v12, %v732_v54 }
 0x552   :  { %v872_v50 = vadd.f32 %v870_v47, %v3542_v49  ;;  %v873_v27 = vadd.f32 %v871_v55, %v3545_v24 }
 0x553   :  { %v2254_v51 = vpop.eup %2253 }
 0x554   :  { %v975_v52 = vadd.f32 1.0, %v2254_v51  ;;  %v2126_v53 = vmul.f32 -1.442695, %v872_v50 }
 0x556   :  { %2255 = vrcp.f32 %v975_v52  ;;  %v988_v0 = vand.u32 2147483648, %v975_v52  ;;  %v986_v60 = vand.u32 2147483647, %v975_v52  ;;  %vm982_vm13 = vweird.f32 %v975_v52 }
 0x557   :  { %2257 = vpow2.f32 %v2126_v53 }
 0x558   :  { %2259 = vtanh.f32 %v968_v23  ;;  %v989_v14 = vor.u32 1.1754944e-38, %v988_v0  ;;  %vm987_vm15 = vcmp.eq.f32.partialorder %v986_v60, 8.507059e+37 }
 0x55c   :  { %v2256_v1 = vpop.eup %2255 }
 0x55d   :  { %v978_v25 = vmul.f32 %v2256_v1, %v975_v52  ;;  %v2258_v59 = vpop.eup %2257  ;;  %vm983_vm12 = vweird.f32 %v2256_v1  ;;  %v2127_v52 = vmul.f32 -1.442695, %v873_v27 }
 0x55e   :  { %v880_v22 = vadd.f32 1.0, %v2258_v59  ;;  %vm984_vm14 = vmor %vm982_vm13, %vm983_vm12  ;;  %v2260_v62 = vpop.eup %2259 }
 0x55f   :  { %v979_v56 = vsub.f32 1.0, %v978_v25 }
 0x560   :  { %2261 = vrcp.f32 %v880_v22  ;;  %v893_v29 = vand.u32 2147483648, %v880_v22  ;;  %v891_v31 = vand.u32 2147483647, %v880_v22  ;;  %vm887_vm2 = vweird.f32 %v880_v22 }
 0x561   :  { %v980_v26 = vmul.f32 %v2256_v1, %v979_v56  ;;  %2263 = vtanh.f32 %v873_v27 }
 0x562   :  { %v894_v35 = vor.u32 1.1754944e-38, %v893_v29  ;;  %vm892_vm4 = vcmp.eq.f32.partialorder %v891_v31, 8.507059e+37  ;;  %2265 = vpow2.f32 %v2131_v44  ;;  %v3095_v31 = vld [vmem:[#allocation8 + $0xf0] sm:$0xff]  ;;  %v3116_v44 = vld [vmem:[#allocation8 + $0x98] sm:$0xff] }
 0x563   :  { %v981_v63 = vadd.f32 %v2256_v1, %v980_v26 }
 0x565   :  { %v985_v16 = vsel %vm984_vm14, %v2256_v1, %v981_v63 }
 0x566   :  { %v990_v5 = vsel %vm987_vm15, %v989_v14, %v985_v16  ;;  %v2262_v10 = vpop.eup %2261 }
 0x567   :  { %v1009_v3 = vmul.f32 %v2260_v62, %v990_v5  ;;  %v883_v2 = vmul.f32 %v2262_v10, %v880_v22  ;;  %vm888_vm1 = vweird.f32 %v2262_v10  ;;  %v2264_v40 = vpop.eup %2263  ;;  %v1008_v54 = vmul.f32 %v990_v5, %v3016_v28 }
 0x568   :  { %vm889_vm3 = vmor %vm887_vm2, %vm888_vm1  ;;  %v2266_v45 = vpop.eup %2265 }
 0x569   :  { %1011 = vrot.lane.b32.xlu2 %v1009_v3, %s2571_s4  ;;  %v884_v13 = vsub.f32 1.0, %v883_v2  ;;  %v976_v46 = vadd.f32 1.0, %v2266_v45  ;;  %v3119_v45 = vld [vmem:[#allocation8 + $0x70] sm:$0xff] }
 0x56b   :  { %v885_v30 = vmul.f32 %v2262_v10, %v884_v13  ;;  %2267 = vrcp.f32 %v976_v46  ;;  %v1003_v1 = vand.u32 2147483648, %v976_v46  ;;  %vm997_vm6 = vweird.f32 %v976_v46 }
 0x56c   :  { %2269 = vpow2.f32 %v2127_v52  ;;  %v1001_v23 = vand.u32 2147483647, %v976_v46  ;;  %v3134_v52 = vld [vmem:[#allocation8 + $0x38] sm:$0xff] }
 0x56d   :  { %v886_v34 = vadd.f32 %v2262_v10, %v885_v30  ;;  %v1004_v59 = vor.u32 1.1754944e-38, %v1003_v1  ;;  %v3148_v1 = vld [vmem:[#allocation8 + $0xe8] sm:$0xff] }
 0x56e   :  { %vm1002_vm8 = vcmp.eq.f32.partialorder %v1001_v23, 8.507059e+37  ;;  %v3151_v23 = vld [vmem:[#allocation8 + $0xc0] sm:$0xff] }
 0x56f   :  { %v890_v39 = vsel %vm889_vm3, %v2262_v10, %v886_v34  ;;  %v3098_v34 = vld [vmem:[#allocation8 + $0xf8] sm:$0xff] }
 0x570   :  { %v895_v42 = vsel %vm892_vm4, %v894_v35, %v890_v39  ;;  %v3101_v35 = vld [vmem:[#allocation8 + $0xd0] sm:$0xff]  ;;  %v3104_v39 = vld [vmem:[#allocation8 + $0xd8] sm:$0xff] }
 0x571   :  { %v914_v43 = vmul.f32 %v2264_v40, %v895_v42  ;;  %v2268_v47 = vpop.eup %2267  ;;  %v913_v14 = vmul.f32 %v895_v42, %v3012_v11  ;;  %v3107_v40 = vld [vmem:[#allocation8 + $0xb0] sm:$0xff]  ;;  %v3110_v42 = vld [vmem:[#allocation8 + $0xb8] sm:$0xff] }
 0x572   :  { %v993_v50 = vmul.f32 %v2268_v47, %v976_v46  ;;  %vm998_vm5 = vweird.f32 %v2268_v47  ;;  %v2270_v22 = vpop.eup %2269  ;;  %v3122_v46 = vld [vmem:[#allocation8 + $0x78] sm:$0xff] }
 0x573   :  { %916 = vrot.lane.b32.xlu1 %v914_v43, %s2571_s4  ;;  %vm999_vm7 = vmor %vm997_vm6, %vm998_vm5  ;;  %v881_v28 = vadd.f32 1.0, %v2270_v22  ;;  %v3113_v43 = vld [vmem:[#allocation8 + $0x90] sm:$0xff]  ;;  %v3160_v22 = vld [vmem:[#allocation8 + $0xa8] sm:$0xff] }
 0x574   :  { %v994_v51 = vsub.f32 1.0, %v993_v50  ;;  %v3128_v50 = vld [vmem:[#allocation8 + $0x58] sm:$0xff] }
 0x575   :  { %v908_v10 = vand.u32 2147483648, %v881_v28  ;;  %vm902_vm11 = vweird.f32 %v881_v28  ;;  %v906_v27 = vand.u32 2147483647, %v881_v28 }
 0x576   :  { %v995_v53 = vmul.f32 %v2268_v47, %v994_v51  ;;  %v3131_v51 = vld [vmem:[#allocation8 + $0x30] sm:$0xff] }
 0x577   :  { %v909_v2 = vor.u32 1.1754944e-38, %v908_v10  ;;  %vm907_vm12 = vcmp.eq.f32.partialorder %v906_v27, 8.507059e+37 }
 0x578   :  { %v996_v8 = vadd.f32 %v2268_v47, %v995_v53  ;;  %v3137_v53 = vld [vmem:[#allocation8 + $0x10] sm:$0xff] }
 0x57a   :  { %v1000_v25 = vsel %vm999_vm7, %v2268_v47, %v996_v8  ;;  %v3125_v47 = vld [vmem:[#allocation8 + $0x50] sm:$0xff]  ;;  %v3145_v8 = vld [vmem:[#allocation8 + $0xe0] sm:$0xff] }
 0x57b   :  { %v1005_v12 = vsel %vm1002_vm8, %v1004_v59, %v1000_v25  ;;  %v3154_v25 = vld [vmem:[#allocation8 + $0xc8] sm:$0xff]  ;;  %v3157_v59 = vld [vmem:[#allocation8 + $0xa0] sm:$0xff] }
 0x5c3   :  { %v1012_v4 = vpop.permute.xlu2 %1011 }
 0x5c4   :  { %v3084_v7 = vadd.f32 %v1012_v4, %v1008_v54  ;;  %v3140_v54 = vld [vmem:[#allocation8 + $0x18] sm:$0xff] }
 0x5c6   :  { %2271 = vtanh.f32 %v3084_v7 }
 0x5c7   :  { %2273 = vrcp.f32 %v881_v28 }
 0x5cc   :  { %v2272_v56 = vpop.eup %2271 }
 0x5cd   :  { %v1016_v0 = vmul.f32 %v2272_v56, %v1005_v12  ;;  %v2274_v26 = vpop.eup %2273  ;;  %v3163_v56 = vld [vmem:[#allocation8 + $0x80] sm:$0xff]  ;;  %v3166_v12 = vld [vmem:[#allocation8 + $0x88] sm:$0xff] }
 0x5ce   :  { %v898_v60 = vmul.f32 %v2274_v26, %v881_v28  ;;  %vm903_vm10 = vweird.f32 %v2274_v26  ;;  %v3174_v28 = vld [vmem:[#allocation8 + $0x68] sm:$0xff] }
 0x5cf   :  { %1018 = vrot.lane.b32.xlu1 %v1016_v0, %s2571_s4  ;;  %vm904_vm0 = vmor %vm902_vm11, %vm903_vm10  ;;  %v3171_v0 = vld [vmem:[#allocation8 + $0x60] sm:$0xff] }
 0x5d0   :  { %v899_v55 = vsub.f32 1.0, %v898_v60  ;;  %v3180_v60 = vld [vmem:[#allocation8 + $0x48] sm:$0xff] }
 0x5d2   :  { %v900_v63 = vmul.f32 %v2274_v26, %v899_v55  ;;  %v3183_v55 = vld [vmem:[#allocation8 + $0x20] sm:$0xff] }
 0x5d4   :  { %v901_v5 = vadd.f32 %v2274_v26, %v900_v63  ;;  %v3186_v63 = vld [vmem:[#allocation8 + $0x28] sm:$0xff] }
 0x5d6   :  { %v905_v3 = vsel %vm904_vm0, %v2274_v26, %v901_v5  ;;  %v3177_v26 = vld [vmem:[#allocation8 + $0x40] sm:$0xff] }
 0x5d7   :  { %v910_v29 = vsel %vm907_vm12, %v909_v2, %v905_v3 }
 0x5e5   :  { %v917_v16 = vpop.permute.xlu1 %916 }
 0x5e6   :  { %v3089_v62 = vadd.f32 %v917_v16, %v913_v14  ;;  %v3189_v14 = vld [vmem:[#allocation8] sm:$0xff]  ;;  %v3192_v16 = vld [vmem:[#allocation8 + $0x8] sm:$0xff] }
 0x5e8   :  { %2275 = vtanh.f32 %v3089_v62 }
 0x5ee   :  { %v2276_v13 = vpop.eup %2275 }
 0x5ef   :  { %v921_v30 = vmul.f32 %v2276_v13, %v910_v29 }
 0x5f1   :  { %923 = vrot.lane.b32.xlu0 %v921_v30, %s2571_s4 }
 0x641   :  { %v1019_v11 = vpop.permute.xlu1 %1018 }
 0x642   :  { %2132 = vmatmul.msk.f32.vlgmr.msra.gmra.mxu2 %vm323_vm9, %v1019_v11  ;;  %2133 = vmatmul.msk.f32.vlgmr.msra.gmra.mxu3 %vm323_vm9, %v1019_v11 }
 0x643   :  { %1302 = vmatpush.msra.mxu2 %v3095_v31  ;;  %1322 = vmatpush.msra.mxu3 %v3098_v34 }
 0x645   :  { %1303 = vmatpush.msra.mxu2 %v3101_v35  ;;  %1323 = vmatpush.msra.mxu3 %v3104_v39 }
 0x647   :  { %1304 = vmatpush.msra.mxu2 %v3107_v40  ;;  %1324 = vmatpush.msra.mxu3 %v3110_v42 }
 0x649   :  { %1305 = vmatpush.msra.mxu2 %v3113_v43  ;;  %1325 = vmatpush.msra.mxu3 %v3116_v44 }
 0x64b   :  { %1306 = vmatpush.msra.mxu2 %v3119_v45  ;;  %1326 = vmatpush.msra.mxu3 %v3122_v46 }
 0x64d   :  { %1307 = vmatpush.msra.mxu2 %v3125_v47  ;;  %1327 = vmatpush.msra.mxu3 %v3128_v50 }
 0x64f   :  { %1308 = vmatpush.msra.mxu2 %v3131_v51  ;;  %1328 = vmatpush.msra.mxu3 %v3134_v52 }
 0x651   :  { %1309 = vmatpush.msra.mxu2 %v3137_v53  ;;  %1329 = vmatpush.msra.mxu3 %v3140_v54 }
 0x663   :  { %v924_v4 = vpop.permute.xlu0 %923 }
 0x664   :  { %2128 = vmatmul.msk.f32.vlgmr.msrb.gmra.mxu0 %vm323_vm9, %v924_v4  ;;  %2129 = vmatmul.msk.f32.vlgmr.msrb.gmra.mxu1 %vm323_vm9, %v924_v4 }
 0x665   :  { %1262 = vmatpush.msrb.mxu0 %v3145_v8  ;;  %1282 = vmatpush.msrb.mxu1 %v3148_v1 }
 0x667   :  { %1263 = vmatpush.msrb.mxu0 %v3151_v23  ;;  %1283 = vmatpush.msrb.mxu1 %v3154_v25 }
 0x669   :  { %1264 = vmatpush.msrb.mxu0 %v3157_v59  ;;  %1284 = vmatpush.msrb.mxu1 %v3160_v22 }
 0x66b   :  { %1265 = vmatpush.msrb.mxu0 %v3163_v56  ;;  %1285 = vmatpush.msrb.mxu1 %v3166_v12 }
 0x66c   :  { %2134 = vmatmul.msk.f32.vlgmr.msra.gmra.mxu0 %vm323_vm9, %v1019_v11  ;;  %2135 = vmatmul.msk.f32.vlgmr.msra.gmra.mxu1 %vm323_vm9, %v1019_v11 }
 0x66d   :  { %1266 = vmatpush.msrb.mxu0 %v3171_v0  ;;  %1286 = vmatpush.msrb.mxu1 %v3174_v28 }
 0x66f   :  { %1267 = vmatpush.msrb.mxu0 %v3177_v26  ;;  %1287 = vmatpush.msrb.mxu1 %v3180_v60 }
 0x671   :  { %1268 = vmatpush.msrb.mxu0 %v3183_v55  ;;  %1288 = vmatpush.msrb.mxu1 %v3186_v63 }
 0x673   :  { %1269 = vmatpush.msrb.mxu0 %v3189_v14  ;;  %1289 = vmatpush.msrb.mxu1 %v3192_v16 }
 0x675   :  { %1399 = vmatpush.msra.mxu0 %v2821_v61  ;;  %1419 = vmatpush.msra.mxu1 %v2823_v9  ;;  %v3546_v61 = vld [vmem:[#allocation30_spill] sm:$0xff] }
 0x676   :  { %v218_v9 = vadd.f32 %v3546_v61, %v3540_v38 }
 0x677   :  { %1400 = vmatpush.msra.mxu0 %v2825_v15  ;;  %1420 = vmatpush.msra.mxu1 %v2831_v17 }
 0x679   :  { %1401 = vmatpush.msra.mxu0 %v2833_v18  ;;  %1421 = vmatpush.msra.mxu1 %v2835_v19 }
 0x67b   :  { %1402 = vmatpush.msra.mxu0 %v2839_v20  ;;  %1422 = vmatpush.msra.mxu1 %v2841_v21 }
 0x67d   :  { %1403 = vmatpush.msra.mxu0 %v2847_v41  ;;  %1423 = vmatpush.msra.mxu1 %v2849_v57  ;;  %v3547_v41 = vld [vmem:[#allocation33_spill] sm:$0xff] }
 0x67e   :  { %v259_v57 = vadd.f32 %v3547_v41, %v3543_v6 }
 0x67f   :  { %1404 = vmatpush.msra.mxu0 %v2855_v58  ;;  %1424 = vmatpush.msra.mxu1 %v2857_v48 }
 0x681   :  { %1405 = vmatpush.msra.mxu0 %v3534_v32  ;;  %1425 = vmatpush.msra.mxu1 %v3535_v33 }
 0x683   :  { %1406 = vmatpush.msra.mxu0 %v3538_v36  ;;  %1426 = vmatpush.msra.mxu1 %v3539_v37 }
 0x6c5   :  { %v1039_v15 = vpop.f32.mrf.mxu2  ;;  %v1059_v21 = vpop.f32.mrf.mxu3 }
 0x6c6   :  { %v1199_v17 = vadd.f32 %v1039_v15, %v218_v9  ;;  %v1200_v48 = vadd.f32 %v1059_v21, %v259_v57 }
 0x6c8   :  { %v2140_v18 = vmul.f32 -1.442695, %v1199_v17 }
 0x6ca   :  { %2277 = vpow2.f32 %v2140_v18 }
 0x6d0   :  { %v2278_v19 = vpop.eup %2277 }
 0x6d1   :  { %v1207_v20 = vadd.f32 1.0, %v2278_v19 }
 0x6d3   :  { %2279 = vrcp.f32 %v1207_v20  ;;  %v1220_v36 = vand.u32 2147483648, %v1207_v20  ;;  %v1218_v5 = vand.u32 2147483647, %v1207_v20  ;;  %vm1214_vm14 = vweird.f32 %v1207_v20 }
 0x6d4   :  { %2281 = vtanh.f32 %v1200_v48 }
 0x6d5   :  { %v1221_v27 = vor.u32 1.1754944e-38, %v1220_v36  ;;  %vm1219_vm1 = vcmp.eq.f32.partialorder %v1218_v5, 8.507059e+37 }
 0x6d9   :  { %v2280_v58 = vpop.eup %2279 }
 0x6da   :  { %v1210_v32 = vmul.f32 %v2280_v58, %v1207_v20  ;;  %vm1215_vm13 = vweird.f32 %v2280_v58  ;;  %v2282_v13 = vpop.eup %2281 }
 0x6db   :  { %vm1216_vm15 = vmor %vm1214_vm14, %vm1215_vm13 }
 0x6dc   :  { %v1211_v33 = vsub.f32 1.0, %v1210_v32 }
 0x6de   :  { %v1212_v37 = vmul.f32 %v2280_v58, %v1211_v33 }
 0x6e0   :  { %v1213_v10 = vadd.f32 %v2280_v58, %v1212_v37 }
 0x6e1   :  { %v944_v3 = vpop.f32.mrf.mxu0  ;;  %v964_v9 = vpop.f32.mrf.mxu1 }
 0x6e2   :  { %v1217_v2 = vsel %vm1216_vm15, %v2280_v58, %v1213_v10 }
 0x6e3   :  { %v1222_v29 = vsel %vm1219_vm1, %v1221_v27, %v1217_v2 }
 0x6e4   :  { %v1241_v30 = vmul.f32 %v2282_v13, %v1222_v29  ;;  %v2141_v13 = vmul.f32 -1.442695, %v1200_v48 }
 0x6e6   :  { %1243 = vrot.lane.b32.xlu0 %v1241_v30, %s2571_s4 }
 0x6e9   :  { %v1079_v11 = vpop.f32.mrf.mxu0  ;;  %v1099_v19 = vpop.f32.mrf.mxu1 }
 0x6ea   :  { %v1102_v4 = vadd.f32 %v1079_v11, %v944_v3  ;;  %v1103_v20 = vadd.f32 %v1099_v19, %v964_v9 }
 0x6ec   :  { %v1104_v61 = vadd.f32 %v1102_v4, %v3542_v49  ;;  %v1105_v41 = vadd.f32 %v1103_v20, %v3545_v24  ;;  %v1240_v20 = vmul.f32 %v1222_v29, %v3084_v7 }
 0x6ee   :  { %v2136_v15 = vmul.f32 -1.442695, %v1104_v61  ;;  %v2137_v4 = vmul.f32 -1.442695, %v1105_v41 }
 0x6f0   :  { %2283 = vpow2.f32 %v2136_v15 }
 0x6f6   :  { %v2284_v17 = vpop.eup %2283 }
 0x6f7   :  { %v1112_v18 = vadd.f32 1.0, %v2284_v17 }
 0x6f9   :  { %2285 = vrcp.f32 %v1112_v18  ;;  %v1125_v32 = vand.u32 2147483648, %v1112_v18  ;;  %v1123_v36 = vand.u32 2147483647, %v1112_v18  ;;  %vm1119_vm3 = vweird.f32 %v1112_v18 }
 0x6fa   :  { %2287 = vtanh.f32 %v1105_v41 }
 0x6fb   :  { %v1126_v5 = vor.u32 1.1754944e-38, %v1125_v32  ;;  %vm1124_vm5 = vcmp.eq.f32.partialorder %v1123_v36, 8.507059e+37  ;;  %2289 = vpow2.f32 %v2141_v13 }
 0x6ff   :  { %v2286_v21 = vpop.eup %2285 }
 0x700   :  { %v1115_v57 = vmul.f32 %v2286_v21, %v1112_v18  ;;  %vm1120_vm2 = vweird.f32 %v2286_v21  ;;  %v2288_v27 = vpop.eup %2287 }
 0x701   :  { %vm1121_vm4 = vmor %vm1119_vm3, %vm1120_vm2  ;;  %v2290_v30 = vpop.eup %2289 }
 0x702   :  { %v1116_v58 = vsub.f32 1.0, %v1115_v57  ;;  %v1208_v11 = vadd.f32 1.0, %v2290_v30 }
 0x704   :  { %v1117_v33 = vmul.f32 %v2286_v21, %v1116_v58  ;;  %2291 = vrcp.f32 %v1208_v11  ;;  %v1235_v41 = vand.u32 2147483648, %v1208_v11  ;;  %vm1229_vm7 = vweird.f32 %v1208_v11 }
 0x705   :  { %2293 = vpow2.f32 %v2137_v4  ;;  %v1233_v32 = vand.u32 2147483647, %v1208_v11 }
 0x706   :  { %v1118_v37 = vadd.f32 %v2286_v21, %v1117_v33 }
 0x707   :  { %vm1234_vm10 = vcmp.eq.f32.partialorder %v1233_v32, 8.507059e+37  ;;  %v3282_v32 = vld [vmem:[#allocation9 + $0x58] sm:$0xff] }
 0x708   :  { %v1122_v10 = vsel %vm1121_vm4, %v2286_v21, %v1118_v37  ;;  %v1236_v37 = vor.u32 1.1754944e-38, %v1235_v41  ;;  %v3279_v41 = vld [vmem:[#allocation9 + $0x50] sm:$0xff] }
 0x709   :  { %v1127_v3 = vsel %vm1124_vm5, %v1126_v5, %v1122_v10 }
 0x70a   :  { %v1146_v2 = vmul.f32 %v2288_v27, %v1127_v3  ;;  %v2292_v61 = vpop.eup %2291 }
 0x70b   :  { %v2294_v9 = vpop.eup %2293  ;;  %v1225_v15 = vmul.f32 %v2292_v61, %v1208_v11  ;;  %vm1230_vm6 = vweird.f32 %v2292_v61 }
 0x70c   :  { %1148 = vrot.lane.b32.xlu2 %v1146_v2, %s2571_s4  ;;  %v1113_v17 = vadd.f32 1.0, %v2294_v9  ;;  %vm1231_vm8 = vmor %vm1229_vm7, %vm1230_vm6  ;;  %v1145_v2 = vmul.f32 %v1127_v3, %v3089_v62 }
 0x70d   :  { %v1226_v18 = vsub.f32 1.0, %v1225_v15 }
 0x70e   :  { %2295 = vrcp.f32 %v1113_v17  ;;  %v1140_v11 = vand.u32 2147483648, %v1113_v17  ;;  %vm1134_vm0 = vweird.f32 %v1113_v17 }
 0x70f   :  { %v1227_v19 = vmul.f32 %v2292_v61, %v1226_v18 }
 0x710   :  { %v1141_v15 = vor.u32 1.1754944e-38, %v1140_v11 }
 0x711   :  { %v1228_v48 = vadd.f32 %v2292_v61, %v1227_v19 }
 0x713   :  { %v1232_v36 = vsel %vm1231_vm8, %v2292_v61, %v1228_v48  ;;  %v1138_v61 = vand.u32 2147483647, %v1113_v17  ;;  %v3276_v48 = vld [vmem:[#allocation9 + $0x68] sm:$0xff] }
 0x714   :  { %v2296_v58 = vpop.eup %2295  ;;  %v1237_v10 = vsel %vm1234_vm10, %v1236_v37, %v1232_v36  ;;  %v3288_v36 = vld [vmem:[#allocation9 + $0x48] sm:$0xff]  ;;  %v3291_v37 = vld [vmem:[#allocation9 + $0x30] sm:$0xff] }
 0x715   :  { %v1130_v33 = vmul.f32 %v2296_v58, %v1113_v17  ;;  %vm1135_vm11 = vweird.f32 %v2296_v58  ;;  %vm1139_vm13 = vcmp.eq.f32.partialorder %v1138_v61, 8.507059e+37  ;;  %v3267_v17 = vld [vmem:[#allocation9 + $0x70] sm:$0xff] }
 0x716   :  { %vm1136_vm12 = vmor %vm1134_vm0, %vm1135_vm11 }
 0x717   :  { %v1131_v27 = vsub.f32 1.0, %v1130_v33  ;;  %v3285_v33 = vld [vmem:[#allocation9 + $0x40] sm:$0xff] }
 0x719   :  { %v1132_v29 = vmul.f32 %v2296_v58, %v1131_v27  ;;  %v3300_v27 = vld [vmem:[#allocation9 + $0x28] sm:$0xff] }
 0x71a   :  { %3550 = vst [vmem:[#allocation19_spill] sm:$0xff] %v3300_v27 }
 0x71b   :  { %v1133_v4 = vadd.f32 %v2296_v58, %v1132_v29  ;;  %v3306_v29 = vld [vmem:[#allocation9 + $0x18] sm:$0xff] }
 0x71c   :  { %3552 = vst [vmem:[#allocation25_spill] sm:$0xff] %v3306_v29 }
 0x71d   :  { %v1137_v9 = vsel %vm1136_vm12, %v2296_v58, %v1133_v4  ;;  %v3273_v58 = vld [vmem:[#allocation9 + $0x60] sm:$0xff]  ;;  %v3555_v4 = vld [vmem:[#allocation32_spill] sm:$0xff] }
 0x71e   :  { %v1142_v19 = vsel %vm1139_vm13, %v1141_v15, %v1137_v9  ;;  %v221_v11 = vadd.f32 %v3555_v4, %v3540_v38 }
 0x758   :  { %v1244_v21 = vpop.permute.xlu0 %1243 }
 0x759   :  { %v3220_v57 = vadd.f32 %v1244_v21, %v1240_v20  ;;  %v3270_v21 = vld [vmem:[#allocation9 + $0x78] sm:$0xff] }
 0x75b   :  { %2297 = vtanh.f32 %v3220_v57 }
 0x761   :  { %v2298_v5 = vpop.eup %2297 }
 0x762   :  { %v1248_v7 = vmul.f32 %v2298_v5, %v1237_v10  ;;  %v3294_v5 = vld [vmem:[#allocation9 + $0x38] sm:$0xff]  ;;  %v3297_v10 = vld [vmem:[#allocation9 + $0x20] sm:$0xff] }
 0x763   :  { %3548 = vst [vmem:[#allocation26_spill] sm:$0xff] %v3294_v5 }
 0x764   :  { %1250 = vrot.lane.b32.xlu2 %v1248_v7, %s2571_s4  ;;  %3549 = vst [vmem:[#allocation18_spill] sm:$0xff] %v3297_v10  ;;  %v3303_v7 = vld [vmem:[#allocation9 + $0x10] sm:$0xff] }
 0x765   :  { %3551 = vst [vmem:[#allocation24_spill] sm:$0xff] %v3303_v7 }
 0x766   :  { %v1149_v13 = vpop.permute.xlu2 %1148 }
 0x767   :  { %v3225_v30 = vadd.f32 %v1149_v13, %v1145_v2  ;;  %v3309_v2 = vld [vmem:[#allocation9] sm:$0xff]  ;;  %v3312_v13 = vld [vmem:[#allocation9 + $0x8] sm:$0xff] }
 0x768   :  { %3553 = vst [vmem:[#allocation20_spill] sm:$0xff] %v3309_v2 }
 0x769   :  { %2299 = vtanh.f32 %v3225_v30  ;;  %3554 = vst [vmem:[#allocation21_spill] sm:$0xff] %v3312_v13 }
 0x76f   :  { %v2300_v18 = vpop.eup %2299 }
 0x770   :  { %v1153_v20 = vmul.f32 %v2300_v18, %v1142_v19 }
 0x772   :  { %1155 = vrot.lane.b32.xlu1 %v1153_v20, %s2571_s4 }
 0x7be   :  { %v1251_v62 = vpop.permute.xlu2 %1250 }
 0x7bf   :  { %2142 = vmatmul.msk.f32.vlgmr.msrb.gmra.mxu0 %vm323_vm9, %v1251_v62  ;;  %2143 = vmatmul.msk.f32.vlgmr.msrb.gmra.mxu1 %vm323_vm9, %v1251_v62 }
 0x7c0   :  { %1534 = vmatpush.msrb.mxu0 %v3095_v31  ;;  %1554 = vmatpush.msrb.mxu1 %v3098_v34 }
 0x7c2   :  { %1535 = vmatpush.msrb.mxu0 %v3101_v35  ;;  %1555 = vmatpush.msrb.mxu1 %v3104_v39 }
 0x7c4   :  { %1536 = vmatpush.msrb.mxu0 %v3107_v40  ;;  %1556 = vmatpush.msrb.mxu1 %v3110_v42 }
 0x7c6   :  { %1537 = vmatpush.msrb.mxu0 %v3113_v43  ;;  %1557 = vmatpush.msrb.mxu1 %v3116_v44 }
 0x7c8   :  { %1538 = vmatpush.msrb.mxu0 %v3119_v45  ;;  %1558 = vmatpush.msrb.mxu1 %v3122_v46 }
 0x7ca   :  { %1539 = vmatpush.msrb.mxu0 %v3125_v47  ;;  %1559 = vmatpush.msrb.mxu1 %v3128_v50 }
 0x7cc   :  { %1540 = vmatpush.msrb.mxu0 %v3131_v51  ;;  %1560 = vmatpush.msrb.mxu1 %v3134_v52 }
 0x7ce   :  { %1541 = vmatpush.msrb.mxu0 %v3137_v53  ;;  %1561 = vmatpush.msrb.mxu1 %v3140_v54 }
 0x7e4   :  { %v1156_v3 = vpop.permute.xlu1 %1155 }
 0x7e5   :  { %2138 = vmatmul.msk.f32.vlgmr.msrb.gmra.mxu2 %vm323_vm9, %v1156_v3  ;;  %2139 = vmatmul.msk.f32.vlgmr.msrb.gmra.mxu3 %vm323_vm9, %v1156_v3 }
 0x7e6   :  { %1494 = vmatpush.msrb.mxu2 %v3145_v8  ;;  %1514 = vmatpush.msrb.mxu3 %v3148_v1 }
 0x7e8   :  { %1495 = vmatpush.msrb.mxu2 %v3151_v23  ;;  %1515 = vmatpush.msrb.mxu3 %v3154_v25 }
 0x7ea   :  { %1496 = vmatpush.msrb.mxu2 %v3157_v59  ;;  %1516 = vmatpush.msrb.mxu3 %v3160_v22 }
 0x7ec   :  { %1497 = vmatpush.msrb.mxu2 %v3163_v56  ;;  %1517 = vmatpush.msrb.mxu3 %v3166_v12 }
 0x7ed   :  { %2144 = vmatmul.msk.f32.vlgmr.msra.gmra.mxu2 %vm323_vm9, %v1251_v62  ;;  %2145 = vmatmul.msk.f32.vlgmr.msra.gmra.mxu3 %vm323_vm9, %v1251_v62  ;;  %v3556_v62 = vld [vmem:[#allocation35_spill] sm:$0xff] }
 0x7ee   :  { %1498 = vmatpush.msrb.mxu2 %v3171_v0  ;;  %1518 = vmatpush.msrb.mxu3 %v3174_v28  ;;  %v262_v3 = vadd.f32 %v3556_v62, %v3543_v6 }
 0x7f0   :  { %1499 = vmatpush.msrb.mxu2 %v3177_v26  ;;  %1519 = vmatpush.msrb.mxu3 %v3180_v60 }
 0x7f2   :  { %1500 = vmatpush.msrb.mxu2 %v3183_v55  ;;  %1520 = vmatpush.msrb.mxu3 %v3186_v63 }
 0x7f4   :  { %1501 = vmatpush.msrb.mxu2 %v3189_v14  ;;  %1521 = vmatpush.msrb.mxu3 %v3192_v16 }
 0x7f6   :  { %1631 = vmatpush.msra.mxu2 %v3267_v17  ;;  %1651 = vmatpush.msra.mxu3 %v3270_v21 }
 0x7f8   :  { %1632 = vmatpush.msra.mxu2 %v3273_v58  ;;  %1652 = vmatpush.msra.mxu3 %v3276_v48 }
 0x7fa   :  { %1633 = vmatpush.msra.mxu2 %v3279_v41  ;;  %1653 = vmatpush.msra.mxu3 %v3282_v32 }
 0x7fc   :  { %1634 = vmatpush.msra.mxu2 %v3285_v33  ;;  %1654 = vmatpush.msra.mxu3 %v3288_v36 }
 0x7fe   :  { %1635 = vmatpush.msra.mxu2 %v3291_v37  ;;  %1655 = vmatpush.msra.mxu3 %v3294_v5 }
 0x800   :  { %1636 = vmatpush.msra.mxu2 %v3297_v10  ;;  %1656 = vmatpush.msra.mxu3 %v3300_v27 }
 0x802   :  { %1637 = vmatpush.msra.mxu2 %v3303_v7  ;;  %1657 = vmatpush.msra.mxu3 %v3306_v29 }
 0x804   :  { %1638 = vmatpush.msra.mxu2 %v3309_v2  ;;  %1658 = vmatpush.msra.mxu3 %v3312_v13 }
 0x83c   :  { %v1271_v61 = vpop.f32.mrf.mxu0  ;;  %v1291_v20 = vpop.f32.mrf.mxu1 }
 0x83d   :  { %v1431_v9 = vadd.f32 %v1271_v61, %v221_v11  ;;  %v1432_v2 = vadd.f32 %v1291_v20, %v262_v3 }
 0x83f   :  { %v2150_v15 = vmul.f32 -1.442695, %v1431_v9 }
 0x841   :  { %2301 = vpow2.f32 %v2150_v15 }
 0x847   :  { %v2302_v18 = vpop.eup %2301 }
 0x848   :  { %v1439_v19 = vadd.f32 1.0, %v2302_v18 }
 0x84a   :  { %2303 = vrcp.f32 %v1439_v19  ;;  %v1452_v13 = vand.u32 2147483648, %v1439_v19  ;;  %v1450_v4 = vand.u32 2147483647, %v1439_v19  ;;  %vm1446_vm15 = vweird.f32 %v1439_v19 }
 0x84b   :  { %2305 = vtanh.f32 %v1432_v2 }
 0x84c   :  { %v1453_v11 = vor.u32 1.1754944e-38, %v1452_v13  ;;  %vm1451_vm2 = vcmp.eq.f32.partialorder %v1450_v4, 8.507059e+37 }
 0x850   :  { %v2304_v29 = vpop.eup %2303 }
 0x851   :  { %v1442_v7 = vmul.f32 %v2304_v29, %v1439_v19  ;;  %vm1447_vm14 = vweird.f32 %v2304_v29  ;;  %v2306_v9 = vpop.eup %2305 }
 0x852   :  { %vm1448_vm1 = vmor %vm1446_vm15, %vm1447_vm14 }
 0x853   :  { %v1443_v27 = vsub.f32 1.0, %v1442_v7 }
 0x855   :  { %v1444_v10 = vmul.f32 %v2304_v29, %v1443_v27 }
 0x857   :  { %v1445_v38 = vadd.f32 %v2304_v29, %v1444_v10 }
 0x859   :  { %v1449_v61 = vsel %vm1448_vm1, %v2304_v29, %v1445_v38 }
 0x85a   :  { %v1454_v15 = vsel %vm1451_vm2, %v1453_v11, %v1449_v61 }
 0x85b   :  { %v1473_v18 = vmul.f32 %v2306_v9, %v1454_v15 }
 0x85d   :  { %1475 = vrot.lane.b32.xlu1 %v1473_v18, %s2571_s4 }
 0x868   :  { %v1176_v62 = vpop.f32.mrf.mxu2  ;;  %v1196_v6 = vpop.f32.mrf.mxu3 }
 0x870   :  { %v1311_v20 = vpop.f32.mrf.mxu2  ;;  %v1331_v19 = vpop.f32.mrf.mxu3 }
 0x871   :  { %v1334_v3 = vadd.f32 %v1311_v20, %v1176_v62  ;;  %v1335_v13 = vadd.f32 %v1331_v19, %v1196_v6  ;;  %v2151_v6 = vmul.f32 -1.442695, %v1432_v2 }
 0x873   :  { %v1336_v7 = vadd.f32 %v1334_v3, %v3542_v49  ;;  %v1337_v29 = vadd.f32 %v1335_v13, %v3545_v24 }
 0x875   :  { %v2146_v27 = vmul.f32 -1.442695, %v1336_v7 }
 0x877   :  { %2307 = vpow2.f32 %v2146_v27 }
 0x87d   :  { %v2308_v5 = vpop.eup %2307 }
 0x87e   :  { %v1344_v10 = vadd.f32 1.0, %v2308_v5 }
 0x880   :  { %2309 = vrcp.f32 %v1344_v10  ;;  %v1357_v61 = vand.u32 2147483648, %v1344_v10  ;;  %v1355_v18 = vand.u32 2147483647, %v1344_v10  ;;  %vm1351_vm4 = vweird.f32 %v1344_v10 }
 0x881   :  { %2311 = vtanh.f32 %v1337_v29 }
 0x882   :  { %v1358_v20 = vor.u32 1.1754944e-38, %v1357_v61  ;;  %vm1356_vm6 = vcmp.eq.f32.partialorder %v1355_v18, 8.507059e+37  ;;  %2313 = vpow2.f32 %v2151_v6 }
 0x886   :  { %v2310_v38 = vpop.eup %2309 }
 0x887   :  { %v1347_v4 = vmul.f32 %v2310_v38, %v1344_v10  ;;  %vm1352_vm3 = vweird.f32 %v2310_v38  ;;  %v2312_v5 = vpop.eup %2311  ;;  %v1472_v10 = vmul.f32 %v1454_v15, %v3220_v57 }
 0x888   :  { %vm1353_vm5 = vmor %vm1351_vm4, %vm1352_vm3  ;;  %v2314_v19 = vpop.eup %2313 }
 0x889   :  { %v1348_v11 = vsub.f32 1.0, %v1347_v4  ;;  %v1440_v13 = vadd.f32 1.0, %v2314_v19 }
 0x88b   :  { %v1349_v9 = vmul.f32 %v2310_v38, %v1348_v11  ;;  %2315 = vrcp.f32 %v1440_v13  ;;  %v1467_v18 = vand.u32 2147483648, %v1440_v13  ;;  %vm1461_vm8 = vweird.f32 %v1440_v13 }
 0x88c   :  { %v1465_v2 = vand.u32 2147483647, %v1440_v13 }
 0x88d   :  { %v1350_v62 = vadd.f32 %v2310_v38, %v1349_v9 }
 0x88e   :  { %vm1466_vm11 = vcmp.eq.f32.partialorder %v1465_v2, 8.507059e+37 }
 0x88f   :  { %v1354_v3 = vsel %vm1353_vm5, %v2310_v38, %v1350_v62 }
 0x890   :  { %v1359_v7 = vsel %vm1356_vm6, %v1358_v20, %v1354_v3  ;;  %v1468_v20 = vor.u32 1.1754944e-38, %v1467_v18 }
 0x891   :  { %v1378_v27 = vmul.f32 %v2312_v5, %v1359_v7  ;;  %v2316_v4 = vpop.eup %2315 }
 0x892   :  { %v1457_v11 = vmul.f32 %v2316_v4, %v1440_v13  ;;  %vm1462_vm7 = vweird.f32 %v2316_v4  ;;  %v1377_v13 = vmul.f32 %v1359_v7, %v3225_v30 }
 0x893   :  { %1380 = vrot.lane.b32.xlu0 %v1378_v27, %s2571_s4  ;;  %vm1463_vm10 = vmor %vm1461_vm8, %vm1462_vm7 }
 0x894   :  { %v1458_v24 = vsub.f32 1.0, %v1457_v11 }
 0x896   :  { %v1459_v49 = vmul.f32 %v2316_v4, %v1458_v24  ;;  %v2147_v24 = vmul.f32 -1.442695, %v1337_v29 }
 0x898   :  { %v1460_v38 = vadd.f32 %v2316_v4, %v1459_v49 }
 0x89a   :  { %v1464_v62 = vsel %vm1463_vm10, %v2316_v4, %v1460_v38 }
 0x89b   :  { %v1469_v5 = vsel %vm1466_vm11, %v1468_v20, %v1464_v62 }
 0x8cf   :  { %v1476_v9 = vpop.permute.xlu1 %1475 }
 0x8d0   :  { %v3324_v61 = vadd.f32 %v1476_v9, %v1472_v10 }
 0x8d2   :  { %2317 = vtanh.f32 %v3324_v61 }
 0x8d3   :  { %2319 = vpow2.f32 %v2147_v24 }
 0x8d8   :  { %v2318_v3 = vpop.eup %2317 }
 0x8d9   :  { %v1480_v27 = vmul.f32 %v2318_v3, %v1469_v5  ;;  %v2320_v57 = vpop.eup %2319 }
 0x8da   :  { %v1345_v15 = vadd.f32 1.0, %v2320_v57 }
 0x8db   :  { %1482 = vrot.lane.b32.xlu0 %v1480_v27, %s2571_s4 }
 0x8dc   :  { %2321 = vrcp.f32 %v1345_v15  ;;  %v1372_v38 = vand.u32 2147483648, %v1345_v15  ;;  %vm1366_vm12 = vweird.f32 %v1345_v15  ;;  %v1370_v29 = vand.u32 2147483647, %v1345_v15 }
 0x8de   :  { %v1373_v2 = vor.u32 1.1754944e-38, %v1372_v38  ;;  %vm1371_vm14 = vcmp.eq.f32.partialorder %v1370_v29, 8.507059e+37 }
 0x8e2   :  { %v2322_v49 = vpop.eup %2321 }
 0x8e3   :  { %v1362_v6 = vmul.f32 %v2322_v49, %v1345_v15  ;;  %vm1367_vm0 = vweird.f32 %v2322_v49 }
 0x8e4   :  { %vm1368_vm13 = vmor %vm1366_vm12, %vm1367_vm0 }
 0x8e5   :  { %v1363_v19 = vsub.f32 1.0, %v1362_v6 }
 0x8e7   :  { %v1364_v11 = vmul.f32 %v2322_v49, %v1363_v19 }
 0x8e9   :  { %v1365_v9 = vadd.f32 %v2322_v49, %v1364_v11 }
 0x8eb   :  { %v1369_v18 = vsel %vm1368_vm13, %v2322_v49, %v1365_v9 }
 0x8ec   :  { %v1374_v20 = vsel %vm1371_vm14, %v1373_v2, %v1369_v18 }
 0x905   :  { %v1381_v10 = vpop.permute.xlu0 %1380 }
 0x906   :  { %v3329_v4 = vadd.f32 %v1381_v10, %v1377_v13  ;;  %v3568_v10 = vld [vmem:[#allocation22_spill] sm:$0xff] }
 0x908   :  { %2323 = vtanh.f32 %v3329_v4 }
 0x90e   :  { %v2324_v62 = vpop.eup %2323 }
 0x90f   :  { %v1385_v3 = vmul.f32 %v2324_v62, %v1374_v20 }
 0x911   :  { %1387 = vrot.lane.b32.xlu2 %v1385_v3, %s2571_s4 }
 0x94d   :  { %v1483_v30 = vpop.permute.xlu0 %1482 }
 0x94e   :  { %2152 = vmatmul.msk.f32.vlgmr.msrb.gmra.mxu2 %vm323_vm9, %v1483_v30  ;;  %2153 = vmatmul.msk.f32.vlgmr.msrb.gmra.mxu3 %vm323_vm9, %v1483_v30 }
 0x94f   :  { %1766 = vmatpush.msrb.mxu2 %v3095_v31  ;;  %1786 = vmatpush.msrb.mxu3 %v3098_v34 }
 0x951   :  { %1767 = vmatpush.msrb.mxu2 %v3101_v35  ;;  %1787 = vmatpush.msrb.mxu3 %v3104_v39 }
 0x953   :  { %1768 = vmatpush.msrb.mxu2 %v3107_v40  ;;  %1788 = vmatpush.msrb.mxu3 %v3110_v42 }
 0x955   :  { %1769 = vmatpush.msrb.mxu2 %v3113_v43  ;;  %1789 = vmatpush.msrb.mxu3 %v3116_v44 }
 0x957   :  { %1770 = vmatpush.msrb.mxu2 %v3119_v45  ;;  %1790 = vmatpush.msrb.mxu3 %v3122_v46 }
 0x959   :  { %1771 = vmatpush.msrb.mxu2 %v3125_v47  ;;  %1791 = vmatpush.msrb.mxu3 %v3128_v50 }
 0x95b   :  { %1772 = vmatpush.msrb.mxu2 %v3131_v51  ;;  %1792 = vmatpush.msrb.mxu3 %v3134_v52 }
 0x95d   :  { %1773 = vmatpush.msrb.mxu2 %v3137_v53  ;;  %1793 = vmatpush.msrb.mxu3 %v3140_v54 }
 0x96b   :  { %v1388_v7 = vpop.permute.xlu2 %1387 }
 0x96c   :  { %2148 = vmatmul.msk.f32.vlgmr.msra.gmra.mxu0 %vm323_vm9, %v1388_v7  ;;  %2149 = vmatmul.msk.f32.vlgmr.msra.gmra.mxu1 %vm323_vm9, %v1388_v7 }
 0x96d   :  { %1726 = vmatpush.msra.mxu0 %v3145_v8  ;;  %1746 = vmatpush.msra.mxu1 %v3148_v1  ;;  %v3557_v8 = vld [vmem:[#allocation26_spill] sm:$0xff] }
 0x96e   :  { %v3558_v1 = vld [vmem:[#allocation18_spill] sm:$0xff] }
 0x96f   :  { %1727 = vmatpush.msra.mxu0 %v3151_v23  ;;  %1747 = vmatpush.msra.mxu1 %v3154_v25  ;;  %v3559_v23 = vld [vmem:[#allocation19_spill] sm:$0xff]  ;;  %v3560_v25 = vld [vmem:[#allocation24_spill] sm:$0xff] }
 0x971   :  { %1728 = vmatpush.msra.mxu0 %v3157_v59  ;;  %1748 = vmatpush.msra.mxu1 %v3160_v22  ;;  %v3561_v59 = vld [vmem:[#allocation25_spill] sm:$0xff]  ;;  %v3562_v22 = vld [vmem:[#allocation20_spill] sm:$0xff] }
 0x973   :  { %1729 = vmatpush.msra.mxu0 %v3163_v56  ;;  %1749 = vmatpush.msra.mxu1 %v3166_v12  ;;  %v3563_v56 = vld [vmem:[#allocation21_spill] sm:$0xff]  ;;  %v3564_v12 = vld [vmem:[#allocation16_spill] sm:$0xff] }
 0x974   :  { %2154 = vmatmul.msk.f32.vlgmr.msrb.gmra.mxu0 %vm323_vm9, %v1483_v30  ;;  %2155 = vmatmul.msk.f32.vlgmr.msrb.gmra.mxu1 %vm323_vm9, %v1483_v30  ;;  %v3569_v30 = vld [vmem:[#allocation23_spill] sm:$0xff] }
 0x975   :  { %1730 = vmatpush.msra.mxu0 %v3171_v0  ;;  %1750 = vmatpush.msra.mxu1 %v3174_v28  ;;  %v3565_v0 = vld [vmem:[#allocation34_spill] sm:$0xff] }
 0x976   :  { %v224_v28 = vadd.f32 %v3565_v0, %v3564_v12 }
 0x977   :  { %1731 = vmatpush.msra.mxu0 %v3177_v26  ;;  %1751 = vmatpush.msra.mxu1 %v3180_v60 }
 0x979   :  { %1732 = vmatpush.msra.mxu0 %v3183_v55  ;;  %1752 = vmatpush.msra.mxu1 %v3186_v63 }
 0x97b   :  { %1733 = vmatpush.msra.mxu0 %v3189_v14  ;;  %1753 = vmatpush.msra.mxu1 %v3192_v16 }
 0x97d   :  { %1863 = vmatpush.msrb.mxu0 %v3267_v17  ;;  %1883 = vmatpush.msrb.mxu1 %v3270_v21  ;;  %v3566_v17 = vld [vmem:[#allocation17_spill] sm:$0xff] }
 0x97e   :  { %v3567_v21 = vld [vmem:[#allocation37_spill] sm:$0xff] }
 0x97f   :  { %1864 = vmatpush.msrb.mxu0 %v3273_v58  ;;  %1884 = vmatpush.msrb.mxu1 %v3276_v48  ;;  %v265_v58 = vadd.f32 %v3567_v21, %v3566_v17 }
 0x981   :  { %1865 = vmatpush.msrb.mxu0 %v3279_v41  ;;  %1885 = vmatpush.msrb.mxu1 %v3282_v32 }
 0x983   :  { %1866 = vmatpush.msrb.mxu0 %v3285_v33  ;;  %1886 = vmatpush.msrb.mxu1 %v3288_v36 }
 0x985   :  { %1867 = vmatpush.msrb.mxu0 %v3291_v37  ;;  %1887 = vmatpush.msrb.mxu1 %v3557_v8 }
 0x987   :  { %1868 = vmatpush.msrb.mxu0 %v3558_v1  ;;  %1888 = vmatpush.msrb.mxu1 %v3559_v23 }
 0x989   :  { %1869 = vmatpush.msrb.mxu0 %v3560_v25  ;;  %1889 = vmatpush.msrb.mxu1 %v3561_v59 }
 0x98b   :  { %1870 = vmatpush.msrb.mxu0 %v3562_v22  ;;  %1890 = vmatpush.msrb.mxu1 %v3563_v56 }
 0x9d1   :  { %v1503_v26 = vpop.f32.mrf.mxu2  ;;  %v1523_v16 = vpop.f32.mrf.mxu3 }
 0x9d2   :  { %v1663_v60 = vadd.f32 %v1503_v26, %v224_v28  ;;  %v1664_v41 = vadd.f32 %v1523_v16, %v265_v58 }
 0x9d4   :  { %v2160_v55 = vmul.f32 -1.442695, %v1663_v60 }
 0x9d6   :  { %2325 = vpow2.f32 %v2160_v55  ;;  %v2161_v55 = vmul.f32 -1.442695, %v1664_v41 }
 0x9dc   :  { %v2326_v63 = vpop.eup %2325 }
 0x9dd   :  { %v1671_v14 = vadd.f32 1.0, %v2326_v63 }
 0x9df   :  { %2327 = vrcp.f32 %v1671_v14  ;;  %v1684_v36 = vand.u32 2147483648, %v1671_v14  ;;  %v1682_v27 = vand.u32 2147483647, %v1671_v14  ;;  %vm1678_vm1 = vweird.f32 %v1671_v14 }
 0x9e0   :  { %2329 = vtanh.f32 %v1664_v41 }
 0x9e1   :  { %v1685_v57 = vor.u32 1.1754944e-38, %v1684_v36  ;;  %vm1683_vm3 = vcmp.eq.f32.partialorder %v1682_v27, 8.507059e+37 }
 0x9e5   :  { %v2328_v48 = vpop.eup %2327 }
 0x9e6   :  { %v1674_v32 = vmul.f32 %v2328_v48, %v1671_v14  ;;  %vm1679_vm15 = vweird.f32 %v2328_v48  ;;  %v2330_v49 = vpop.eup %2329 }
 0x9e7   :  { %vm1680_vm2 = vmor %vm1678_vm1, %vm1679_vm15 }
 0x9e8   :  { %v1675_v33 = vsub.f32 1.0, %v1674_v32 }
 0x9e9   :  { %v1408_v37 = vpop.f32.mrf.mxu0  ;;  %v1428_v38 = vpop.f32.mrf.mxu1 }
 0x9ea   :  { %v1676_v5 = vmul.f32 %v2328_v48, %v1675_v33 }
 0x9ec   :  { %v1677_v24 = vadd.f32 %v2328_v48, %v1676_v5 }
 0x9ee   :  { %v1681_v15 = vsel %vm1680_vm2, %v2328_v48, %v1677_v24 }
 0x9ef   :  { %v1686_v6 = vsel %vm1683_vm3, %v1685_v57, %v1681_v15 }
 0x9f0   :  { %v1705_v19 = vmul.f32 %v2330_v49, %v1686_v6  ;;  %v1704_v32 = vmul.f32 %v1686_v6, %v3324_v61 }
 0x9f1   :  { %v1543_v11 = vpop.f32.mrf.mxu0  ;;  %v1563_v62 = vpop.f32.mrf.mxu1 }
 0x9f2   :  { %1707 = vrot.lane.b32.xlu2 %v1705_v19, %s2571_s4  ;;  %v1566_v13 = vadd.f32 %v1543_v11, %v1408_v37  ;;  %v1567_v20 = vadd.f32 %v1563_v62, %v1428_v38 }
 0x9f4   :  { %v1568_v9 = vadd.f32 %v1566_v13, %v3568_v10  ;;  %v1569_v7 = vadd.f32 %v1567_v20, %v3569_v30 }
 0x9f6   :  { %v2156_v29 = vmul.f32 -1.442695, %v1568_v9  ;;  %v2157_v61 = vmul.f32 -1.442695, %v1569_v7 }
 0x9f8   :  { %2331 = vpow2.f32 %v2156_v29 }
 0x9fe   :  { %v2332_v18 = vpop.eup %2331 }
 0x9ff   :  { %v1576_v2 = vadd.f32 1.0, %v2332_v18 }
 0xa01   :  { %2333 = vrcp.f32 %v1576_v2  ;;  %v1589_v23 = vand.u32 2147483648, %v1576_v2  ;;  %v1587_v59 = vand.u32 2147483647, %v1576_v2  ;;  %vm1583_vm5 = vweird.f32 %v1576_v2 }
 0xa02   :  { %2335 = vtanh.f32 %v1569_v7 }
 0xa03   :  { %v1590_v56 = vor.u32 1.1754944e-38, %v1589_v23  ;;  %vm1588_vm7 = vcmp.eq.f32.partialorder %v1587_v59, 8.507059e+37  ;;  %2337 = vpow2.f32 %v2161_v55 }
 0xa07   :  { %v2334_v3 = vpop.eup %2333 }
 0xa08   :  { %v1579_v8 = vmul.f32 %v2334_v3, %v1576_v2  ;;  %vm1584_vm4 = vweird.f32 %v2334_v3  ;;  %v2336_v28 = vpop.eup %2335 }
 0xa09   :  { %vm1585_vm6 = vmor %vm1583_vm5, %vm1584_vm4  ;;  %v2338_v63 = vpop.eup %2337 }
 0xa0a   :  { %v1580_v1 = vsub.f32 1.0, %v1579_v8  ;;  %v1672_v14 = vadd.f32 1.0, %v2338_v63 }
 0xa0c   :  { %v1581_v25 = vmul.f32 %v2334_v3, %v1580_v1  ;;  %2339 = vrcp.f32 %v1672_v14  ;;  %v1699_v5 = vand.u32 2147483648, %v1672_v14  ;;  %vm1693_vm10 = vweird.f32 %v1672_v14 }
 0xa0d   :  { %v1697_v41 = vand.u32 2147483647, %v1672_v14 }
 0xa0e   :  { %v1582_v22 = vadd.f32 %v2334_v3, %v1581_v25  ;;  %v1700_v24 = vor.u32 1.1754944e-38, %v1699_v5 }
 0xa0f   :  { %vm1698_vm0 = vcmp.eq.f32.partialorder %v1697_v41, 8.507059e+37 }
 0xa10   :  { %v1586_v0 = vsel %vm1585_vm6, %v2334_v3, %v1582_v22 }
 0xa11   :  { %v1591_v26 = vsel %vm1588_vm7, %v1590_v56, %v1586_v0 }
 0xa12   :  { %v1610_v60 = vmul.f32 %v2336_v28, %v1591_v26  ;;  %v2340_v16 = vpop.eup %2339  ;;  %v1609_v29 = vmul.f32 %v1591_v26, %v3329_v4 }
 0xa13   :  { %v1689_v21 = vmul.f32 %v2340_v16, %v1672_v14  ;;  %vm1694_vm8 = vweird.f32 %v2340_v16 }
 0xa14   :  { %1612 = vrot.lane.b32.xlu1 %v1610_v60, %s2571_s4  ;;  %vm1695_vm11 = vmor %vm1693_vm10, %vm1694_vm8 }
 0xa15   :  { %v1690_v58 = vsub.f32 1.0, %v1689_v21 }
 0xa17   :  { %v1691_v48 = vmul.f32 %v2340_v16, %v1690_v58 }
 0xa19   :  { %v1692_v37 = vadd.f32 %v2340_v16, %v1691_v48 }
 0xa1b   :  { %v1696_v27 = vsel %vm1695_vm11, %v2340_v16, %v1692_v37 }
 0xa1c   :  { %v1701_v15 = vsel %vm1698_vm0, %v1700_v24, %v1696_v27 }
 0xa4c   :  { %v1708_v33 = vpop.permute.xlu2 %1707 }
 0xa4d   :  { %v3396_v36 = vadd.f32 %v1708_v33, %v1704_v32 }
 0xa4f   :  { %2341 = vtanh.f32 %v3396_v36 }
 0xa50   :  { %2343 = vpow2.f32 %v2157_v61 }
 0xa55   :  { %v2342_v57 = vpop.eup %2341 }
 0xa56   :  { %v1712_v49 = vmul.f32 %v2342_v57, %v1701_v15  ;;  %v2344_v6 = vpop.eup %2343 }
 0xa57   :  { %v1577_v19 = vadd.f32 1.0, %v2344_v6 }
 0xa58   :  { %1714 = vrot.lane.b32.xlu1 %v1712_v49, %s2571_s4 }
 0xa59   :  { %2345 = vrcp.f32 %v1577_v19  ;;  %v1604_v20 = vand.u32 2147483648, %v1577_v19  ;;  %vm1598_vm13 = vweird.f32 %v1577_v19  ;;  %v1602_v3 = vand.u32 2147483647, %v1577_v19 }
 0xa5b   :  { %v1605_v8 = vor.u32 1.1754944e-38, %v1604_v20  ;;  %vm1603_vm15 = vcmp.eq.f32.partialorder %v1602_v3, 8.507059e+37 }
 0xa5f   :  { %v2346_v11 = vpop.eup %2345 }
 0xa60   :  { %v1594_v13 = vmul.f32 %v2346_v11, %v1577_v19  ;;  %vm1599_vm12 = vweird.f32 %v2346_v11 }
 0xa61   :  { %vm1600_vm14 = vmor %vm1598_vm13, %vm1599_vm12 }
 0xa62   :  { %v1595_v9 = vsub.f32 1.0, %v1594_v13 }
 0xa64   :  { %v1596_v38 = vmul.f32 %v2346_v11, %v1595_v9 }
 0xa66   :  { %v1597_v62 = vadd.f32 %v2346_v11, %v1596_v38 }
 0xa68   :  { %v1601_v7 = vsel %vm1600_vm14, %v2346_v11, %v1597_v62 }
 0xa69   :  { %v1606_v23 = vsel %vm1603_vm15, %v1605_v8, %v1601_v7 }
 0xa86   :  { %v1613_v18 = vpop.permute.xlu1 %1612 }
 0xa87   :  { %v3401_v2 = vadd.f32 %v1613_v18, %v1609_v29 }
 0xa89   :  { %2347 = vtanh.f32 %v3401_v2 }
 0xa8f   :  { %v2348_v1 = vpop.eup %2347 }
 0xa90   :  { %v1617_v25 = vmul.f32 %v2348_v1, %v1606_v23 }
 0xa92   :  { %1619 = vrot.lane.b32.xlu0 %v1617_v25, %s2571_s4 }
 0xaca   :  { %v1715_v4 = vpop.permute.xlu1 %1714 }
 0xacb   :  { %2162 = vmatmul.msk.f32.vlgmr.msra.gmra.mxu0 %vm323_vm9, %v1715_v4  ;;  %2163 = vmatmul.msk.f32.vlgmr.msra.gmra.mxu1 %vm323_vm9, %v1715_v4 }
 0xb04   :  { %v1620_v59 = vpop.permute.xlu0 %1619 }
 0xb05   :  { %2158 = vmatmul.msk.f32.vlgmr.msra.gmra.mxu2 %vm323_vm9, %v1620_v59  ;;  %2159 = vmatmul.msk.f32.vlgmr.msra.gmra.mxu3 %vm323_vm9, %v1620_v59 }
 0xb06   :  { %1958 = vmatpush.msra.mxu2 %v3095_v31  ;;  %1978 = vmatpush.msra.mxu3 %v3098_v34  ;;  %v3570_v31 = vld [vmem:[#allocation36_spill] sm:$0xff] }
 0xb07   :  { %v227_v34 = vadd.f32 %v3570_v31, %v3564_v12 }
 0xb08   :  { %1959 = vmatpush.msra.mxu2 %v3101_v35  ;;  %1979 = vmatpush.msra.mxu3 %v3104_v39 }
 0xb0a   :  { %1960 = vmatpush.msra.mxu2 %v3107_v40  ;;  %1980 = vmatpush.msra.mxu3 %v3110_v42 }
 0xb0c   :  { %1961 = vmatpush.msra.mxu2 %v3113_v43  ;;  %1981 = vmatpush.msra.mxu3 %v3116_v44 }
 0xb0d   :  { %2164 = vmatmul.msk.f32.vlgmr.msrb.gmra.mxu2 %vm323_vm9, %v1715_v4  ;;  %2165 = vmatmul.msk.f32.vlgmr.msrb.gmra.mxu3 %vm323_vm9, %v1715_v4 }
 0xb0e   :  { %1962 = vmatpush.msra.mxu2 %v3119_v45  ;;  %1982 = vmatpush.msra.mxu3 %v3122_v46  ;;  %v3571_v45 = vld [vmem:[#allocation38_spill] sm:$0xff] }
 0xb0f   :  { %v268_v46 = vadd.f32 %v3571_v45, %v3566_v17 }
 0xb10   :  { %1963 = vmatpush.msra.mxu2 %v3125_v47  ;;  %1983 = vmatpush.msra.mxu3 %v3128_v50 }
 0xb12   :  { %1964 = vmatpush.msra.mxu2 %v3131_v51  ;;  %1984 = vmatpush.msra.mxu3 %v3134_v52 }
 0xb14   :  { %1965 = vmatpush.msra.mxu2 %v3137_v53  ;;  %1985 = vmatpush.msra.mxu3 %v3140_v54 }
 0xb48   :  { %v1735_v35 = vpop.f32.mrf.mxu0  ;;  %v1755_v44 = vpop.f32.mrf.mxu1 }
 0xb49   :  { %v1895_v39 = vadd.f32 %v1735_v35, %v227_v34  ;;  %v1896_v50 = vadd.f32 %v1755_v44, %v268_v46 }
 0xb4b   :  { %v2170_v40 = vmul.f32 -1.442695, %v1895_v39  ;;  %v2171_v48 = vmul.f32 -1.442695, %v1896_v50 }
 0xb4d   :  { %2349 = vpow2.f32 %v2170_v40 }
 0xb53   :  { %v2350_v42 = vpop.eup %2349 }
 0xb54   :  { %v1903_v43 = vadd.f32 1.0, %v2350_v42 }
 0xb56   :  { %2351 = vrcp.f32 %v1903_v43  ;;  %v1916_v53 = vand.u32 2147483648, %v1903_v43  ;;  %v1914_v12 = vand.u32 2147483647, %v1903_v43  ;;  %vm1910_vm2 = vweird.f32 %v1903_v43 }
 0xb57   :  { %2353 = vtanh.f32 %v1896_v50 }
 0xb58   :  { %v1917_v56 = vor.u32 1.1754944e-38, %v1916_v53  ;;  %vm1915_vm4 = vcmp.eq.f32.partialorder %v1914_v12, 8.507059e+37 }
 0xb5c   :  { %v2352_v47 = vpop.eup %2351 }
 0xb5d   :  { %v1906_v51 = vmul.f32 %v2352_v47, %v1903_v43  ;;  %vm1911_vm1 = vweird.f32 %v2352_v47  ;;  %v2354_v28 = vpop.eup %2353 }
 0xb5e   :  { %vm1912_vm3 = vmor %vm1910_vm2, %vm1911_vm1 }
 0xb5f   :  { %v1907_v52 = vsub.f32 1.0, %v1906_v51 }
 0xb61   :  { %v1908_v54 = vmul.f32 %v2352_v47, %v1907_v52 }
 0xb63   :  { %v1909_v22 = vadd.f32 %v2352_v47, %v1908_v54 }
 0xb65   :  { %v1913_v0 = vsel %vm1912_vm3, %v2352_v47, %v1909_v22 }
 0xb66   :  { %v1918_v26 = vsel %vm1915_vm4, %v1917_v56, %v1913_v0 }
 0xb67   :  { %v1937_v60 = vmul.f32 %v2354_v28, %v1918_v26  ;;  %v1936_v7 = vmul.f32 %v1918_v26, %v3396_v36 }
 0xb69   :  { %1939 = vrot.lane.b32.xlu2 %v1937_v60, %s2571_s4 }
 0xb88   :  { %v1640_v17 = vpop.f32.mrf.mxu2  ;;  %v1660_v16 = vpop.f32.mrf.mxu3 }
 0xb90   :  { %v1775_v55 = vpop.f32.mrf.mxu2  ;;  %v1795_v33 = vpop.f32.mrf.mxu3 }
 0xb91   :  { %v1798_v63 = vadd.f32 %v1775_v55, %v1640_v17  ;;  %v1799_v37 = vadd.f32 %v1795_v33, %v1660_v16 }
 0xb93   :  { %v1800_v14 = vadd.f32 %v1798_v63, %v3568_v10  ;;  %v1801_v41 = vadd.f32 %v1799_v37, %v3569_v30 }
 0xb95   :  { %v2166_v21 = vmul.f32 -1.442695, %v1800_v14  ;;  %v2167_v40 = vmul.f32 -1.442695, %v1801_v41  ;;  %v2191_v14 = vld [vmem:[%s3465_s6] ss:$0 sm:$0xff] }
 0xb96   :  { %s2573_s6 = smov [#allocation11]  }
 0xb97   :  { %2355 = vpow2.f32 %v2166_v21  ;;  %s2070_s11 = sshll.u32 %s2573_s6, 4  ;;  %s2071_s11 = int_to_ptr.vmem [resolvable:$true] %s2070_s11 }
 0xb9d   :  { %v2356_v58 = vpop.eup %2355 }
 0xb9e   :  { %v1808_v32 = vadd.f32 1.0, %v2356_v58 }
 0xba0   :  { %2357 = vrcp.f32 %v1808_v32  ;;  %v1821_v15 = vand.u32 2147483648, %v1808_v32  ;;  %v1819_v6 = vand.u32 2147483647, %v1808_v32  ;;  %vm1815_vm6 = vweird.f32 %v1808_v32 }
 0xba1   :  { %2359 = vpow2.f32 %v2171_v48 }
 0xba2   :  { %2361 = vtanh.f32 %v1801_v41  ;;  %v1822_v11 = vor.u32 1.1754944e-38, %v1821_v15  ;;  %vm1820_vm8 = vcmp.eq.f32.partialorder %v1819_v6, 8.507059e+37 }
 0xba6   :  { %v2358_v5 = vpop.eup %2357 }
 0xba7   :  { %v1811_v27 = vmul.f32 %v2358_v5, %v1808_v32  ;;  %v2360_v24 = vpop.eup %2359  ;;  %vm1816_vm5 = vweird.f32 %v2358_v5 }
 0xba8   :  { %v1904_v49 = vadd.f32 1.0, %v2360_v24  ;;  %vm1817_vm7 = vmor %vm1815_vm6, %vm1816_vm5  ;;  %v2362_v9 = vpop.eup %2361 }
 0xba9   :  { %v1812_v57 = vsub.f32 1.0, %v1811_v27 }
 0xbaa   :  { %2363 = vrcp.f32 %v1904_v49  ;;  %v1931_v25 = vand.u32 2147483648, %v1904_v49  ;;  %vm1925_vm11 = vweird.f32 %v1904_v49  ;;  %v1929_v4 = vand.u32 2147483647, %v1904_v49 }
 0xbab   :  { %v1813_v61 = vmul.f32 %v2358_v5, %v1812_v57 }
 0xbac   :  { %v1932_v31 = vor.u32 1.1754944e-38, %v1931_v25  ;;  %vm1930_vm12 = vcmp.eq.f32.partialorder %v1929_v4, 8.507059e+37 }
 0xbad   :  { %v1814_v19 = vadd.f32 %v2358_v5, %v1813_v61 }
 0xbaf   :  { %v1818_v13 = vsel %vm1817_vm7, %v2358_v5, %v1814_v19 }
 0xbb0   :  { %v1823_v38 = vsel %vm1820_vm8, %v1822_v11, %v1818_v13  ;;  %v2364_v18 = vpop.eup %2363 }
 0xbb1   :  { %v1842_v29 = vmul.f32 %v2362_v9, %v1823_v38  ;;  %v1921_v62 = vmul.f32 %v2364_v18, %v1904_v49  ;;  %vm1926_vm10 = vweird.f32 %v2364_v18  ;;  %v1841_v47 = vmul.f32 %v1823_v38, %v3401_v2 }
 0xbb2   :  { %vm1927_vm0 = vmor %vm1925_vm11, %vm1926_vm10 }
 0xbb3   :  { %1844 = vrot.lane.b32.xlu0 %v1842_v29, %s2571_s4  ;;  %v1922_v20 = vsub.f32 1.0, %v1921_v62 }
 0xbb5   :  { %v1923_v3 = vmul.f32 %v2364_v18, %v1922_v20 }
 0xbb7   :  { %v1924_v23 = vadd.f32 %v2364_v18, %v1923_v3 }
 0xbb9   :  { %v1928_v59 = vsel %vm1927_vm0, %v2364_v18, %v1924_v23 }
 0xbba   :  { %v1933_v35 = vsel %vm1930_vm12, %v1932_v31, %v1928_v59 }
 0xbc3   :  { %v1940_v8 = vpop.permute.xlu2 %1939 }
 0xbc4   :  { %v1942_v1 = vadd.f32 %v1940_v8, %v1936_v7 }
 0xbc6   :  { %2365 = vtanh.f32 %v1942_v1 }
 0xbc7   :  { %2367 = vpow2.f32 %v2167_v40 }
 0xbcc   :  { %v2366_v34 = vpop.eup %2365 }
 0xbcd   :  { %v1944_v39 = vmul.f32 %v2366_v34, %v1933_v35  ;;  %v2368_v36 = vpop.eup %2367 }
 0xbce   :  { %v1809_v42 = vadd.f32 1.0, %v2368_v36 }
 0xbcf   :  { %1946 = vrot.lane.b32.xlu1 %v1944_v39, %s2571_s4 }
 0xbd0   :  { %2369 = vrcp.f32 %v1809_v42  ;;  %v1836_v53 = vand.u32 2147483648, %v1809_v42  ;;  %vm1830_vm14 = vweird.f32 %v1809_v42  ;;  %v1834_v54 = vand.u32 2147483647, %v1809_v42 }
 0xbd2   :  { %v1837_v22 = vor.u32 1.1754944e-38, %v1836_v53  ;;  %vm1835_vm1 = vcmp.eq.f32.partialorder %v1834_v54, 8.507059e+37 }
 0xbd6   :  { %v2370_v43 = vpop.eup %2369 }
 0xbd7   :  { %v1826_v44 = vmul.f32 %v2370_v43, %v1809_v42  ;;  %vm1831_vm13 = vweird.f32 %v2370_v43  ;;  %2043 = vrot.lane.b32.xlu1 %v2191_v14, %s2571_s4  ;;  %v2572_v42 = vmov 0  }
 0xbd8   :  { %vm1832_vm15 = vmor %vm1830_vm14, %vm1831_vm13  ;;  %2189 = vset.pattern.permute.xlu1 %v2572_v42  ;;  %2190 = vset.pattern.permute.xlu0 %v2572_v42 }
 0xbd9   :  { %v1827_v45 = vsub.f32 1.0, %v1826_v44 }
 0xbdb   :  { %v1828_v46 = vmul.f32 %v2370_v43, %v1827_v45 }
 0xbdd   :  { %v1829_v52 = vadd.f32 %v2370_v43, %v1828_v46 }
 0xbdf   :  { %v1833_v12 = vsel %vm1832_vm15, %v2370_v43, %v1829_v52  ;;  %v2192_v43 = vld [vmem:[#allocation2] ss:$0 sm:$0xff] }
 0xbe0   :  { %v1838_v0 = vsel %vm1835_vm1, %v1837_v22, %v1833_v12 }
 0xc25   :  { %v1845_v50 = vpop.permute.xlu0 %1844 }
 0xc26   :  { %v3438_v51 = vadd.f32 %v1845_v50, %v1841_v47 }
 0xc28   :  { %2371 = vtanh.f32 %v3438_v51 }
 0xc2e   :  { %v2372_v56 = vpop.eup %2371 }
 0xc2f   :  { %v1849_v28 = vmul.f32 %v2372_v56, %v1838_v0 }
 0xc31   :  { %1851 = vrot.lane.b32.xlu2 %v1849_v28, %s2571_s4 }
 0xc41   :  { %v1947_v2 = vpop.permute.xlu1 %1946 }
 0xc42   :  { %2172 = vmatmul.msk.f32.vlgmr.msra.gmra.mxu2 %vm323_vm9, %v1947_v2  ;;  %2173 = vmatmul.msk.f32.vlgmr.msra.gmra.mxu3 %vm323_vm9, %v1947_v2 }
 0xc49   :  { %v2044_v31 = vpop.permute.xlu1 %2043 }
 0xc8b   :  { %v1852_v26 = vpop.permute.xlu2 %1851 }
 0xc8c   :  { %2168 = vmatmul.msk.f32.vlgmr.msrb.gmra.mxu0 %vm323_vm9, %v1852_v26  ;;  %2169 = vmatmul.msk.f32.vlgmr.msrb.gmra.mxu1 %vm323_vm9, %v1852_v26 }
 0xcc5   :  { %v1967_v60 = vpop.f32.mrf.mxu2  ;;  %v1987_v32 = vpop.f32.mrf.mxu3 }
 0xd09   :  { %v1872_v17 = vpop.f32.mrf.mxu0  ;;  %v1892_v48 = vpop.f32.mrf.mxu1 }
 0xd0a   :  { %v1968_v55 = vadd.f32 %v1967_v60, %v1872_v17  ;;  %v1988_v33 = vadd.f32 %v1987_v32, %v1892_v48 }
 0xd0c   :  { %v1990_v63 = vadd.f32 %v1968_v55, %v3568_v10  ;;  %v1991_v5 = vadd.f32 %v1988_v33, %v3569_v30 }
 0xd0e   :  { %v2174_v16 = vmul.f32 -1.442695, %v1990_v63  ;;  %v2175_v13 = vmul.f32 -1.442695, %v1991_v5 }
 0xd10   :  { %2373 = vpow2.f32 %v2174_v16 }
 0xd16   :  { %v2374_v21 = vpop.eup %2373 }
 0xd17   :  { %v1998_v58 = vadd.f32 1.0, %v2374_v21 }
 0xd19   :  { %2375 = vrcp.f32 %v1998_v58  ;;  %v2011_v10 = vand.u32 2147483648, %v1998_v58  ;;  %v2009_v57 = vand.u32 2147483647, %v1998_v58  ;;  %vm2005_vm3 = vweird.f32 %v1998_v58 }
 0xd1a   :  { %2377 = vtanh.f32 %v1991_v5 }
 0xd1b   :  { %v2012_v49 = vor.u32 1.1754944e-38, %v2011_v10  ;;  %vm2010_vm5 = vcmp.eq.f32.partialorder %v2009_v57, 8.507059e+37  ;;  %2379 = vpow2.f32 %v2175_v13 }
 0xd1f   :  { %v2376_v37 = vpop.eup %2375 }
 0xd20   :  { %v2001_v41 = vmul.f32 %v2376_v37, %v1998_v58  ;;  %vm2006_vm2 = vweird.f32 %v2376_v37  ;;  %v2378_v6 = vpop.eup %2377 }
 0xd21   :  { %vm2007_vm4 = vmor %vm2005_vm3, %vm2006_vm2  ;;  %v2380_v30 = vpop.eup %2379 }
 0xd22   :  { %v2002_v27 = vsub.f32 1.0, %v2001_v41  ;;  %v1999_v9 = vadd.f32 1.0, %v2380_v30 }
 0xd24   :  { %v2003_v24 = vmul.f32 %v2376_v37, %v2002_v27  ;;  %2381 = vrcp.f32 %v1999_v9  ;;  %v2026_v1 = vand.u32 2147483648, %v1999_v9  ;;  %vm2020_vm7 = vweird.f32 %v1999_v9 }
 0xd25   :  { %v2024_v23 = vand.u32 2147483647, %v1999_v9 }
 0xd26   :  { %v2004_v15 = vadd.f32 %v2376_v37, %v2003_v24  ;;  %v2027_v4 = vor.u32 1.1754944e-38, %v2026_v1 }
 0xd27   :  { %vm2025_vm10 = vcmp.eq.f32.partialorder %v2024_v23, 8.507059e+37 }
 0xd28   :  { %v2008_v61 = vsel %vm2007_vm4, %v2376_v37, %v2004_v15 }
 0xd29   :  { %v2013_v19 = vsel %vm2010_vm5, %v2012_v49, %v2008_v61 }
 0xd2a   :  { %v2032_v11 = vmul.f32 %v2378_v6, %v2013_v19  ;;  %v2382_v38 = vpop.eup %2381  ;;  %v2031_v20 = vmul.f32 %v2013_v19, %v3438_v51 }
 0xd2b   :  { %v2016_v29 = vmul.f32 %v2382_v38, %v1999_v9  ;;  %vm2021_vm6 = vweird.f32 %v2382_v38 }
 0xd2c   :  { %2034 = vrot.lane.b32.xlu0 %v2032_v11, %s2571_s4  ;;  %vm2022_vm8 = vmor %vm2020_vm7, %vm2021_vm6 }
 0xd2d   :  { %v2017_v18 = vsub.f32 1.0, %v2016_v29 }
 0xd2f   :  { %v2018_v62 = vmul.f32 %v2382_v38, %v2017_v18 }
 0xd31   :  { %v2019_v8 = vadd.f32 %v2382_v38, %v2018_v62 }
 0xd33   :  { %v2023_v25 = vsel %vm2022_vm8, %v2382_v38, %v2019_v8 }
 0xd34   :  { %v2028_v34 = vsel %vm2025_vm10, %v2027_v4, %v2023_v25 }
 0xd9e   :  { %v2035_v3 = vpop.permute.xlu0 %2034 }
 0xd9f   :  { %v2037_v7 = vadd.f32 %v2035_v3, %v2031_v20 }
 0xda1   :  { %2383 = vtanh.f32 %v2037_v7 }
 0xda7   :  { %v2384_v59 = vpop.eup %2383 }
 0xda8   :  { %v2039_v35 = vmul.f32 %v2384_v59, %v2028_v34 }
 0xdaa   :  { %v2046_v39 = vmul.f32 %v2044_v31, %v2039_v35 }
 0xdac   :  { %2048 = vrot.lane.b32.xlu2 %v2046_v39, %s2571_s4 }
 0xe06   :  { %v2049_v40 = vpop.permute.xlu2 %2048 }
 0xe07   :  { %v2051_v36 = vsel %vm323_vm9, %v2049_v40, 0.0 }
 0xe08   :  { %2052 = vadd.xlane.f32.xlu0 %v2051_v36 }
 0xe7b   :  { %v2053_v44 = vpop.xlane.xlu0 %2052 }
 0xe7c   :  { %v2058_v45 = vadd.f32 %v2192_v43, %v2053_v44 }
 0xe7e   :  { %2061 = vperm.xlu1 %2189, %v2058_v45  }
 0xef0   :  { %v2062_v46 = vpop.permute.xlu1 %2061 }
 0xef1   :  { %2064 = vst [vmem:[#allocation11] sm:$0xff] %v2062_v46 }
 0xef2   :  { %2075 = dma.vmem_to_hbm [thread:$0]  %s2071_s11, 128, %s2073_s14, [#allocation5]  }
 0xef3   :  { %2559 = dma.done.wait [#allocation5], 128  }
 0xef4   :  { %2560 = vsyncadd [#allocation5], 4294967168 }
 0xef5   :  { %2080 = vsyncpa [#allocation4], 1 }
 0xef6   :  { %2081 = vsyncpa [#allocation7], 1 }
 0xef7   :  { %2082 = vsyncpa [#allocation10], 1 }
 0xef8   :  { %2083 = vsyncpa [#allocation5], 1 }

</bundles_post_ra>
